<compile_context>
chip_gen: v7x
topology: tpu7x:2x2x1
jax: 0.10.0
libtpu: 0.0.40
codegen_flags: <defaults>
</compile_context>

<pallas_src>
import functools

import jax
import jax.numpy as jnp
from jax.experimental import pallas as pl
from jax.experimental.pallas import tpu as pltpu


CLS_CHANNELS = 16
MAX_TILE_L = 16384            # max lanes per grid step (multiple of 128)
P_SELECTION_BETA = 2.0        # p_selection['beta']  (== 2 -> explicit square)
QFL_BETA = 2.0                # QFLv2 beta           (== 2 -> explicit square)
_NEG_CLAMP = -100.0           # torch F.binary_cross_entropy log clamp


def _round_up(x, m):
    return ((x + m - 1) // m) * m


def _num_core_splits():
    """2 TensorCores per chip only on v7x; 1 elsewhere (v5e / v6e)."""
    try:
        kind = jax.devices()[0].device_kind.lower()
    except Exception:
        return 1
    return 2 if "v7" in kind else 1


def _choose_tile(n, core_splits):
    per_split = pl.cdiv(n, core_splits)
    return min(MAX_TILE_L, _round_up(per_split, 128))


def _bce_from_logit(s_logit, t_sig):
    """torch F.binary_cross_entropy(sigmoid(s_logit), t_sig, reduction='none').

    log(p) and log(1-p) are computed independently via a stable log-sigmoid
    (one shared exp + one log) and each clamped at -100, matching torch without
    the sign-flip hazard of deriving log(1-p) from an already-clamped log(p).
    """
    e = jnp.exp(-jnp.abs(s_logit))
    lp = jnp.log(1.0 + e)
    log_p = jnp.maximum(jnp.minimum(s_logit, 0.0) - lp, _NEG_CLAMP)      # log σ(x)
    log_1mp = jnp.maximum(jnp.minimum(-s_logit, 0.0) - lp, _NEG_CLAMP)   # log σ(-x)
    return -(t_sig * log_p + (1.0 - t_sig) * log_1mp)


def _loss_kernel(n_ref, t_cls_ref, s_cls_ref, t_bbox_ref, t_cnt_ref,
                 s_bbox_ref, s_cnt_ref, acc_ref, *, tile_l):
    """One column tile of all six inputs -> per-lane partial sums.

    acc rows: 0 cls, 1 bbox, 2 centerness, 3 weight (fg_num), 4 teacher max score.
    """
    c = pl.program_id(0)          # core-split ("parallel") axis
    i = pl.program_id(1)          # reduction axis (accumulator resident across it)

    @pl.when(i == 0)
    def _():
        acc_ref[...] = jnp.zeros_like(acc_ref)

    # Padding mask from SMEM scalar (padded columns hold zeros, but σ(0)=0.5 so
    # they must be masked out of every accumulated quantity).
    col0 = (c * pl.num_programs(1) + i) * tile_l
    col = jax.lax.broadcasted_iota(jnp.int32, (1, tile_l), 1) + col0
    valid = col < n_ref[0]                                               # (1, L) bool

    # --- QFLv2 cls loss (pos_mask all True): BCE(σs, σt) * (σt - σs)^2 ---
    # 16 channels processed as two 8-row halves to keep live ranges short.
    cls_part = jnp.zeros((1, tile_l), jnp.float32)
    t_scores = jnp.zeros((1, tile_l), jnp.float32)        # σ >= 0, so 0 is a max-identity
    for h in range(0, CLS_CHANNELS, 8):
        t = t_cls_ref[h:h + 8, :].astype(jnp.float32)
        s = s_cls_ref[h:h + 8, :].astype(jnp.float32)
        t_sig = jax.nn.sigmoid(t)
        s_sig = jax.nn.sigmoid(s)
        bce = _bce_from_logit(s, t_sig)
        pt = t_sig - s_sig
        cls_part = cls_part + jnp.sum(bce * (pt * pt), axis=0, keepdims=True)
        t_scores = jnp.maximum(t_scores, jnp.max(t_sig, axis=0, keepdims=True))

    # --- SmoothL1(reduction='none') summed over the 5 box params ---
    d = s_bbox_ref[...].astype(jnp.float32) - t_bbox_ref[...].astype(jnp.float32)
    ad = jnp.abs(d)
    sl1 = jnp.where(ad < 1.0, 0.5 * d * d, ad - 0.5)                     # (5, L)
    bbox_sl1 = jnp.sum(sl1, axis=0, keepdims=True)                       # (1, L)

    # --- centerness BCE ---
    t_cnt = t_cnt_ref[...].astype(jnp.float32)
    s_cnt = s_cnt_ref[...].astype(jnp.float32)
    t_c = jax.nn.sigmoid(t_cnt)
    bce_cnt = _bce_from_logit(s_cnt, t_c)                                # (1, L)

    # --- pseudoLabelSelection (mode='global_w'): weight = (max σcls * σcnt)^2 ---
    joint = t_scores * t_c
    weight = jnp.where(valid, joint * joint, 0.0)                        # beta == 2

    # --- single full-block accumulator RMW (per-lane partial sums) ---
    update = jnp.concatenate([
        jnp.where(valid, cls_part, 0.0),
        weight * bbox_sl1,
        weight * bce_cnt,
        weight,
        jnp.where(valid, t_scores, 0.0),
        jnp.zeros((3, tile_l), jnp.float32),
    ], axis=0)                                                           # (8, L)
    acc_ref[...] += update


def _run_loss_kernel(t_cls, s_cls, t_bbox, t_cnt, s_bbox, s_cnt, n_valid,
                     tile_l, core_splits):
    """Inputs: (C, n_pad) channel-major arrays, n_pad % (core_splits*tile_l)==0."""
    n_pad = t_cls.shape[1]
    n_inner = n_pad // (core_splits * tile_l)
    col_map = lambda c, i, n_ref: (0, c * n_inner + i)

    kernel = functools.partial(_loss_kernel, tile_l=tile_l)
    acc = pl.pallas_call(
        kernel,
        out_shape=jax.ShapeDtypeStruct((core_splits * 8, tile_l), jnp.float32),
        grid_spec=pltpu.PrefetchScalarGridSpec(
            num_scalar_prefetch=1,
            grid=(core_splits, n_inner),
            in_specs=[
                pl.BlockSpec((CLS_CHANNELS, tile_l), col_map),   # teacher cls logits
                pl.BlockSpec((CLS_CHANNELS, tile_l), col_map),   # student cls logits
                pl.BlockSpec((5, tile_l), col_map),              # teacher bbox+angle
                pl.BlockSpec((1, tile_l), col_map),              # teacher centerness
                pl.BlockSpec((5, tile_l), col_map),              # student bbox+angle
                pl.BlockSpec((1, tile_l), col_map),              # student centerness
            ],
            out_specs=pl.BlockSpec((8, tile_l), lambda c, i, n_ref: (c, 0)),
        ),
        compiler_params=pltpu.CompilerParams(
            dimension_semantics=("parallel", "arbitrary"),
            vmem_limit_bytes=48 * 1024 * 1024),
    )(jnp.asarray([n_valid], jnp.int32),
      t_cls, s_cls, t_bbox, t_cnt, s_bbox, s_cnt)

    # Final cross-lane + cross-split reduction (once, in glue).
    sums = acc.reshape(core_splits, 8, tile_l).sum(axis=(0, 2))          # (8,)
    return sums[0], sums[1], sums[2], sums[3], sums[4]


def convert_shape_cm(logits, n_pad, cls_channels=CLS_CHANNELS):
    """Channel-major variant of RotatedDTBLLoss.convert_shape: NCHW -> (C, n_pad).

    Zero padding up to n_pad is folded into the (already required) concat, so it
    costs no extra HBM pass.  Anchor ordering differs from the PyTorch reshape,
    which is irrelevant for the fully-reduced losses computed here.
    """
    cls_scores, bbox_preds, angle_preds, centernesses, _fpn_feat = logits

    def cm(x):  # (bs, C, H, W) -> (C, bs*H*W)
        c = x.shape[1]
        return jnp.transpose(x, (1, 0, 2, 3)).reshape(c, -1)

    def cat_pad(parts):
        c = parts[0].shape[0]
        n = sum(p.shape[1] for p in parts)
        if n_pad > n:
            parts = list(parts) + [jnp.zeros((c, n_pad - n), parts[0].dtype)]
        return jnp.concatenate(parts, axis=1)

    cls = cat_pad([cm(x) for x in cls_scores])                                    # (16, n_pad)
    bbox = cat_pad([cm(jnp.concatenate([b, a], axis=1))
                    for b, a in zip(bbox_preds, angle_preds)])                    # (5, n_pad)
    cnt = cat_pad([cm(x) for x in centernesses])                                  # (1, n_pad)
    return cls, bbox, cnt


def rotated_dtbl_loss_forward(teacher_logits, student_logits):
    """Unsupervised distillation losses of RotatedDTBLLoss (mode='global_w')."""
    cls_list = teacher_logits[0]
    bs = int(cls_list[0].shape[0])
    n = bs * sum(int(x.shape[2]) * int(x.shape[3]) for x in cls_list)

    core_splits = _num_core_splits()
    tile_l = _choose_tile(n, core_splits)
    n_pad = _round_up(n, core_splits * tile_l)

    t_cls, t_bbox, t_cnt = convert_shape_cm(teacher_logits, n_pad)
    s_cls, s_bbox, s_cnt = convert_shape_cm(student_logits, n_pad)

    cls_sum, bbox_sum, cnt_sum, w_sum, ts_sum = _run_loss_kernel(
        t_cls, s_cls, t_bbox, t_cnt, s_bbox, s_cnt, n, tile_l, core_splits)

    fg_num = w_sum
    return dict(
        loss_cls=cls_sum / fg_num,
        loss_bbox=bbox_sum / fg_num,
        loss_centerness=cnt_sum / fg_num,
        S_dps=ts_sum / jnp.float32(n),
        # TODO(synk): loss_denoise_box needs decode_and_clustering (rotated
        # multiclass NMS + box_iou_rotated + poly clustering) and the supervised
        # FCOS head loss; not representable as a Pallas kernel here.
    )


def _reference_losses(teacher_logits, student_logits):
    """Pure-JAX reference of the same math (torch semantics; for verification)."""
    cls_list = teacher_logits[0]
    bs = int(cls_list[0].shape[0])
    n = bs * sum(int(x.shape[2]) * int(x.shape[3]) for x in cls_list)
    t_cls, t_bbox, t_cnt = convert_shape_cm(teacher_logits, n)
    s_cls, s_bbox, s_cnt = convert_shape_cm(student_logits, n)

    def bce(pred, target):
        logp = jnp.maximum(jnp.log(pred), -100.0)
        log1mp = jnp.maximum(jnp.log(1.0 - pred), -100.0)
        return -(target * logp + (1.0 - target) * log1mp)

    t_sig, s_sig = jax.nn.sigmoid(t_cls), jax.nn.sigmoid(s_cls)
    t_cs, s_cs = jax.nn.sigmoid(t_cnt), jax.nn.sigmoid(s_cnt)
    t_scores = jnp.max(t_sig, axis=0)                        # (N,)
    joint = t_scores * t_cs[0]
    weight = joint * joint                                   # beta == 2
    fg_num = weight.sum()
    pt = t_sig - s_sig
    loss_cls = bce(s_sig, t_sig) * (pt * pt)
    d = s_bbox - t_bbox
    ad = jnp.abs(d)
    sl1 = jnp.where(ad < 1.0, 0.5 * d * d, ad - 0.5)
    loss_cnt = bce(s_cs, t_cs)[0]
    return dict(
        loss_cls=loss_cls.sum() / fg_num,
        loss_bbox=(weight * sl1.sum(axis=0)).sum() / fg_num,
        loss_centerness=(weight * loss_cnt).sum() / fg_num,
        S_dps=t_scores.mean(),
    )


def _make_logits(key, bs, sizes):
    """Per-level NCHW logits: (cls, bbox, angle, centerness, fpn_feat)."""
    ks = jax.random.split(key, 5 * len(sizes))
    cls_l, bbox_l, ang_l, cnt_l, feat_l = [], [], [], [], []
    for li, hw in enumerate(sizes):
        k0, k1, k2, k3, k4 = ks[5 * li:5 * li + 5]
        cls_l.append(jax.random.normal(k0, (bs, CLS_CHANNELS, hw, hw), jnp.float32))
        bbox_l.append(jax.random.normal(k1, (bs, 4, hw, hw), jnp.float32))
        ang_l.append(jax.random.normal(k2, (bs, 1, hw, hw), jnp.float32))
        cnt_l.append(jax.random.normal(k3, (bs, 1, hw, hw), jnp.float32))
        feat_l.append(jax.random.normal(k4, (bs, 8, hw, hw), jnp.float32))  # stand-in for 256-ch fpn_feat
    return (cls_l, bbox_l, ang_l, cnt_l, feat_l)


if __name__ == "__main__":
    key = jax.random.PRNGKey(0)
    kt, ks = jax.random.split(key)
    bs = 2
    sizes = [16, 8, 4, 2, 1]  # 5 FPN levels (strides 8..128), small spatial dims
    teacher_logits = _make_logits(kt, bs, sizes)
    student_logits = _make_logits(ks, bs, sizes)

    out = rotated_dtbl_loss_forward(teacher_logits, student_logits)
    out = jax.tree_util.tree_map(jax.block_until_ready, out)

    ref = _reference_losses(teacher_logits, student_logits)
    for name in ("loss_cls", "loss_bbox", "loss_centerness", "S_dps"):
        assert jnp.allclose(out[name], ref[name], rtol=1e-3, atol=1e-5), (
            name, out[name], ref[name])

    print("KERNEL_OK")
</pallas_src>

<mosaic_0001>
module attributes {stable_mosaic.version = 11 : i64} {
  func.func @_loss_kernel(%arg0: i32, %arg1: i32, %arg2: memref<1xi32, #tpu.memory_space<smem>>, %arg3: memref<16x768xf32, #tpu.memory_space<vmem>>, %arg4: memref<16x768xf32, #tpu.memory_space<vmem>>, %arg5: memref<5x768xf32, #tpu.memory_space<vmem>>, %arg6: memref<1x768xf32, #tpu.memory_space<vmem>>, %arg7: memref<5x768xf32, #tpu.memory_space<vmem>>, %arg8: memref<1x768xf32, #tpu.memory_space<vmem>>, %arg9: memref<8x768xf32, #tpu.memory_space<vmem>>) attributes {dimension_semantics = [#tpu.dimension_semantics<parallel>, #tpu.dimension_semantics<arbitrary>], iteration_bounds = array<i64: 1, 1>, scalar_prefetch = 1 : i64, scratch_operands = 0 : i64, tpu.core_type = #tpu.core_type<tc>, window_params = [{transform_indices = @transform_0, window_bounds = array<i64: 16, 768>}, {transform_indices = @transform_1, window_bounds = array<i64: 16, 768>}, {transform_indices = @transform_2, window_bounds = array<i64: 5, 768>}, {transform_indices = @transform_3, window_bounds = array<i64: 1, 768>}, {transform_indices = @transform_4, window_bounds = array<i64: 5, 768>}, {transform_indices = @transform_5, window_bounds = array<i64: 1, 768>}, {transform_indices = @transform_6, window_bounds = array<i64: 8, 768>}]} {
    %c0_i32 = arith.constant 0 : i32
    %0 = arith.cmpi eq, %arg1, %c0_i32 : i32
    %1 = arith.extui %0 : i1 to i32
    %c0_i32_0 = arith.constant 0 : i32
    %2 = arith.cmpi ne, %1, %c0_i32_0 : i32
    scf.if %2 {
      %cst_65 = arith.constant 0.000000e+00 : f32
      %170 = vector.broadcast %cst_65 : f32 to vector<8x768xf32>
      %c0_66 = arith.constant 0 : index
      %c0_67 = arith.constant 0 : index
      %171 = vector.load %arg9[%c0_66, %c0_67] : memref<8x768xf32, #tpu.memory_space<vmem>>, vector<8x768xf32>
      tpu.vector_store %arg9[%c0_66, %c0_67], %170 {strides = array<i32>} : memref<8x768xf32, #tpu.memory_space<vmem>>, vector<8x768xf32>,
    } else {
    }
    %c1_i32 = arith.constant 1 : i32
    %3 = arith.muli %arg0, %c1_i32 : i32
    %4 = arith.addi %3, %arg1 : i32
    %c768_i32 = arith.constant 768 : i32
    %5 = arith.muli %4, %c768_i32 : i32
    %6 = tpu.iota {dimensions = array<i32: 1>} : vector<1x768xi32>
    %7 = vector.broadcast %5 : i32 to vector<1x768xi32>
    %8 = arith.addi %6, %7 : vector<1x768xi32>
    %c0 = arith.constant 0 : index
    %9 = memref.load %arg2[%c0] : memref<1xi32, #tpu.memory_space<smem>>
    %10 = vector.broadcast %9 : i32 to vector<1x768xi32>
    %11 = arith.cmpi slt, %8, %10 : vector<1x768xi32>
    %cst = arith.constant 0.000000e+00 : f32
    %12 = vector.broadcast %cst : f32 to vector<1x768xf32>
    %cst_1 = arith.constant 0.000000e+00 : f32
    %13 = vector.broadcast %cst_1 : f32 to vector<1x768xf32>
    %c0_2 = arith.constant 0 : index
    %c0_3 = arith.constant 0 : index
    %14 = vector.load %arg3[%c0_2, %c0_3] : memref<16x768xf32, #tpu.memory_space<vmem>>, vector<8x768xf32>
    %c0_4 = arith.constant 0 : index
    %c0_5 = arith.constant 0 : index
    %15 = vector.load %arg4[%c0_4, %c0_5] : memref<16x768xf32, #tpu.memory_space<vmem>>, vector<8x768xf32>
    %16 = arith.negf %14 : vector<8x768xf32>
    %17 = math.exp %16 : vector<8x768xf32>
    %cst_6 = arith.constant 1.000000e+00 : f32
    %18 = vector.broadcast %cst_6 : f32 to vector<8x768xf32>
    %19 = arith.addf %18, %17 : vector<8x768xf32>
    %20 = arith.divf %18, %19 : vector<8x768xf32>
    %21 = arith.negf %15 : vector<8x768xf32>
    %22 = math.exp %21 : vector<8x768xf32>
    %cst_7 = arith.constant 1.000000e+00 : f32
    %23 = vector.broadcast %cst_7 : f32 to vector<8x768xf32>
    %24 = arith.addf %23, %22 : vector<8x768xf32>
    %25 = arith.divf %23, %24 : vector<8x768xf32>
    %26 = math.absf %15 : vector<8x768xf32>
    %cst_8 = arith.constant 0.000000e+00 : f32
    %27 = vector.broadcast %cst_8 : f32 to vector<8x768xf32>
    %28 = arith.subf %27, %26 : vector<8x768xf32>
    %29 = math.exp %28 : vector<8x768xf32>
    %cst_9 = arith.constant 1.000000e+00 : f32
    %30 = vector.broadcast %cst_9 : f32 to vector<8x768xf32>
    %31 = arith.addf %30, %29 : vector<8x768xf32>
    %32 = math.log %31 : vector<8x768xf32>
    %cst_10 = arith.constant 0.000000e+00 : f32
    %33 = vector.broadcast %cst_10 : f32 to vector<8x768xf32>
    %34 = arith.minimumf %15, %33 : vector<8x768xf32>
    %35 = arith.subf %34, %32 : vector<8x768xf32>
    %cst_11 = arith.constant -1.000000e+02 : f32
    %36 = vector.broadcast %cst_11 : f32 to vector<8x768xf32>
    %37 = arith.maximumf %35, %36 : vector<8x768xf32>
    %cst_12 = arith.constant 0.000000e+00 : f32
    %38 = vector.broadcast %cst_12 : f32 to vector<8x768xf32>
    %39 = arith.subf %38, %15 : vector<8x768xf32>
    %cst_13 = arith.constant 0.000000e+00 : f32
    %40 = vector.broadcast %cst_13 : f32 to vector<8x768xf32>
    %41 = arith.minimumf %39, %40 : vector<8x768xf32>
    %42 = arith.subf %41, %32 : vector<8x768xf32>
    %cst_14 = arith.constant -1.000000e+02 : f32
    %43 = vector.broadcast %cst_14 : f32 to vector<8x768xf32>
    %44 = arith.maximumf %42, %43 : vector<8x768xf32>
    %45 = arith.mulf %20, %37 : vector<8x768xf32>
    %cst_15 = arith.constant 1.000000e+00 : f32
    %46 = vector.broadcast %cst_15 : f32 to vector<8x768xf32>
    %47 = arith.subf %46, %20 : vector<8x768xf32>
    %48 = arith.mulf %47, %44 : vector<8x768xf32>
    %49 = arith.addf %45, %48 : vector<8x768xf32>
    %cst_16 = arith.constant 0.000000e+00 : f32
    %50 = vector.broadcast %cst_16 : f32 to vector<8x768xf32>
    %51 = arith.subf %50, %49 : vector<8x768xf32>
    %52 = arith.subf %20, %25 : vector<8x768xf32>
    %53 = arith.mulf %52, %52 : vector<8x768xf32>
    %54 = arith.mulf %51, %53 : vector<8x768xf32>
    %cst_17 = arith.constant dense<0.000000e+00> : vector<768xf32>
    %55 = vector.multi_reduction <add>, %54, %cst_17 [0] : vector<8x768xf32> to vector<768xf32>
    %56 = vector.shape_cast %55 : vector<768xf32> to vector<1x768xf32>
    %57 = arith.addf %12, %56 : vector<1x768xf32>
    %cst_18 = arith.constant dense<0xFF800000> : vector<768xf32>
    %58 = vector.multi_reduction <maximumf>, %20, %cst_18 [0] : vector<8x768xf32> to vector<768xf32>
    %59 = vector.shape_cast %58 : vector<768xf32> to vector<1x768xf32>
    %60 = arith.maximumf %13, %59 : vector<1x768xf32>
    %c8 = arith.constant 8 : index
    %c0_19 = arith.constant 0 : index
    %61 = vector.load %arg3[%c8, %c0_19] : memref<16x768xf32, #tpu.memory_space<vmem>>, vector<8x768xf32>
    %c8_20 = arith.constant 8 : index
    %c0_21 = arith.constant 0 : index
    %62 = vector.load %arg4[%c8_20, %c0_21] : memref<16x768xf32, #tpu.memory_space<vmem>>, vector<8x768xf32>
    %63 = arith.negf %61 : vector<8x768xf32>
    %64 = math.exp %63 : vector<8x768xf32>
    %cst_22 = arith.constant 1.000000e+00 : f32
    %65 = vector.broadcast %cst_22 : f32 to vector<8x768xf32>
    %66 = arith.addf %65, %64 : vector<8x768xf32>
    %67 = arith.divf %65, %66 : vector<8x768xf32>
    %68 = arith.negf %62 : vector<8x768xf32>
    %69 = math.exp %68 : vector<8x768xf32>
    %cst_23 = arith.constant 1.000000e+00 : f32
    %70 = vector.broadcast %cst_23 : f32 to vector<8x768xf32>
    %71 = arith.addf %70, %69 : vector<8x768xf32>
    %72 = arith.divf %70, %71 : vector<8x768xf32>
    %73 = math.absf %62 : vector<8x768xf32>
    %cst_24 = arith.constant 0.000000e+00 : f32
    %74 = vector.broadcast %cst_24 : f32 to vector<8x768xf32>
    %75 = arith.subf %74, %73 : vector<8x768xf32>
    %76 = math.exp %75 : vector<8x768xf32>
    %cst_25 = arith.constant 1.000000e+00 : f32
    %77 = vector.broadcast %cst_25 : f32 to vector<8x768xf32>
    %78 = arith.addf %77, %76 : vector<8x768xf32>
    %79 = math.log %78 : vector<8x768xf32>
    %cst_26 = arith.constant 0.000000e+00 : f32
    %80 = vector.broadcast %cst_26 : f32 to vector<8x768xf32>
    %81 = arith.minimumf %62, %80 : vector<8x768xf32>
    %82 = arith.subf %81, %79 : vector<8x768xf32>
    %cst_27 = arith.constant -1.000000e+02 : f32
    %83 = vector.broadcast %cst_27 : f32 to vector<8x768xf32>
    %84 = arith.maximumf %82, %83 : vector<8x768xf32>
    %cst_28 = arith.constant 0.000000e+00 : f32
    %85 = vector.broadcast %cst_28 : f32 to vector<8x768xf32>
    %86 = arith.subf %85, %62 : vector<8x768xf32>
    %cst_29 = arith.constant 0.000000e+00 : f32
    %87 = vector.broadcast %cst_29 : f32 to vector<8x768xf32>
    %88 = arith.minimumf %86, %87 : vector<8x768xf32>
    %89 = arith.subf %88, %79 : vector<8x768xf32>
    %cst_30 = arith.constant -1.000000e+02 : f32
    %90 = vector.broadcast %cst_30 : f32 to vector<8x768xf32>
    %91 = arith.maximumf %89, %90 : vector<8x768xf32>
    %92 = arith.mulf %67, %84 : vector<8x768xf32>
    %cst_31 = arith.constant 1.000000e+00 : f32
    %93 = vector.broadcast %cst_31 : f32 to vector<8x768xf32>
    %94 = arith.subf %93, %67 : vector<8x768xf32>
    %95 = arith.mulf %94, %91 : vector<8x768xf32>
    %96 = arith.addf %92, %95 : vector<8x768xf32>
    %cst_32 = arith.constant 0.000000e+00 : f32
    %97 = vector.broadcast %cst_32 : f32 to vector<8x768xf32>
    %98 = arith.subf %97, %96 : vector<8x768xf32>
    %99 = arith.subf %67, %72 : vector<8x768xf32>
    %100 = arith.mulf %99, %99 : vector<8x768xf32>
    %101 = arith.mulf %98, %100 : vector<8x768xf32>
    %cst_33 = arith.constant dense<0.000000e+00> : vector<768xf32>
    %102 = vector.multi_reduction <add>, %101, %cst_33 [0] : vector<8x768xf32> to vector<768xf32>
    %103 = vector.shape_cast %102 : vector<768xf32> to vector<1x768xf32>
    %104 = arith.addf %57, %103 : vector<1x768xf32>
    %cst_34 = arith.constant dense<0xFF800000> : vector<768xf32>
    %105 = vector.multi_reduction <maximumf>, %67, %cst_34 [0] : vector<8x768xf32> to vector<768xf32>
    %106 = vector.shape_cast %105 : vector<768xf32> to vector<1x768xf32>
    %107 = arith.maximumf %60, %106 : vector<1x768xf32>
    %c0_35 = arith.constant 0 : index
    %c0_36 = arith.constant 0 : index
    %108 = vector.load %arg7[%c0_35, %c0_36] : memref<5x768xf32, #tpu.memory_space<vmem>>, vector<5x768xf32>
    %c0_37 = arith.constant 0 : index
    %c0_38 = arith.constant 0 : index
    %109 = vector.load %arg5[%c0_37, %c0_38] : memref<5x768xf32, #tpu.memory_space<vmem>>, vector<5x768xf32>
    %110 = arith.subf %108, %109 : vector<5x768xf32>
    %111 = math.absf %110 : vector<5x768xf32>
    %cst_39 = arith.constant 1.000000e+00 : f32
    %112 = vector.broadcast %cst_39 : f32 to vector<5x768xf32>
    %113 = arith.cmpf olt, %111, %112 : vector<5x768xf32>
    %cst_40 = arith.constant 5.000000e-01 : f32
    %114 = vector.broadcast %cst_40 : f32 to vector<5x768xf32>
    %115 = arith.mulf %114, %110 : vector<5x768xf32>
    %116 = arith.mulf %115, %110 : vector<5x768xf32>
    %cst_41 = arith.constant 5.000000e-01 : f32
    %117 = vector.broadcast %cst_41 : f32 to vector<5x768xf32>
    %118 = arith.subf %111, %117 : vector<5x768xf32>
    %119 = arith.select %113, %116, %118 : vector<5x768xi1>, vector<5x768xf32>
    %cst_42 = arith.constant dense<0.000000e+00> : vector<768xf32>
    %120 = vector.multi_reduction <add>, %119, %cst_42 [0] : vector<5x768xf32> to vector<768xf32>
    %121 = vector.shape_cast %120 : vector<768xf32> to vector<1x768xf32>
    %c0_43 = arith.constant 0 : index
    %c0_44 = arith.constant 0 : index
    %122 = vector.load %arg6[%c0_43, %c0_44] : memref<1x768xf32, #tpu.memory_space<vmem>>, vector<1x768xf32>
    %c0_45 = arith.constant 0 : index
    %c0_46 = arith.constant 0 : index
    %123 = vector.load %arg8[%c0_45, %c0_46] : memref<1x768xf32, #tpu.memory_space<vmem>>, vector<1x768xf32>
    %124 = arith.negf %122 : vector<1x768xf32>
    %125 = math.exp %124 : vector<1x768xf32>
    %cst_47 = arith.constant 1.000000e+00 : f32
    %126 = vector.broadcast %cst_47 : f32 to vector<1x768xf32>
    %127 = arith.addf %126, %125 : vector<1x768xf32>
    %128 = arith.divf %126, %127 : vector<1x768xf32>
    %129 = math.absf %123 : vector<1x768xf32>
    %cst_48 = arith.constant 0.000000e+00 : f32
    %130 = vector.broadcast %cst_48 : f32 to vector<1x768xf32>
    %131 = arith.subf %130, %129 : vector<1x768xf32>
    %132 = math.exp %131 : vector<1x768xf32>
    %cst_49 = arith.constant 1.000000e+00 : f32
    %133 = vector.broadcast %cst_49 : f32 to vector<1x768xf32>
    %134 = arith.addf %133, %132 : vector<1x768xf32>
    %135 = math.log %134 : vector<1x768xf32>
    %cst_50 = arith.constant 0.000000e+00 : f32
    %136 = vector.broadcast %cst_50 : f32 to vector<1x768xf32>
    %137 = arith.minimumf %123, %136 : vector<1x768xf32>
    %138 = arith.subf %137, %135 : vector<1x768xf32>
    %cst_51 = arith.constant -1.000000e+02 : f32
    %139 = vector.broadcast %cst_51 : f32 to vector<1x768xf32>
    %140 = arith.maximumf %138, %139 : vector<1x768xf32>
    %cst_52 = arith.constant 0.000000e+00 : f32
    %141 = vector.broadcast %cst_52 : f32 to vector<1x768xf32>
    %142 = arith.subf %141, %123 : vector<1x768xf32>
    %cst_53 = arith.constant 0.000000e+00 : f32
    %143 = vector.broadcast %cst_53 : f32 to vector<1x768xf32>
    %144 = arith.minimumf %142, %143 : vector<1x768xf32>
    %145 = arith.subf %144, %135 : vector<1x768xf32>
    %cst_54 = arith.constant -1.000000e+02 : f32
    %146 = vector.broadcast %cst_54 : f32 to vector<1x768xf32>
    %147 = arith.maximumf %145, %146 : vector<1x768xf32>
    %148 = arith.mulf %128, %140 : vector<1x768xf32>
    %cst_55 = arith.constant 1.000000e+00 : f32
    %149 = vector.broadcast %cst_55 : f32 to vector<1x768xf32>
    %150 = arith.subf %149, %128 : vector<1x768xf32>
    %151 = arith.mulf %150, %147 : vector<1x768xf32>
    %152 = arith.addf %148, %151 : vector<1x768xf32>
    %cst_56 = arith.constant 0.000000e+00 : f32
    %153 = vector.broadcast %cst_56 : f32 to vector<1x768xf32>
    %154 = arith.subf %153, %152 : vector<1x768xf32>
    %155 = arith.mulf %107, %128 : vector<1x768xf32>
    %156 = arith.mulf %155, %155 : vector<1x768xf32>
    %cst_57 = arith.constant 0.000000e+00 : f32
    %157 = vector.broadcast %cst_57 : f32 to vector<1x768xf32>
    %158 = arith.select %11, %156, %157 : vector<1x768xi1>, vector<1x768xf32>
    %cst_58 = arith.constant 0.000000e+00 : f32
    %159 = vector.broadcast %cst_58 : f32 to vector<1x768xf32>
    %160 = arith.select %11, %104, %159 : vector<1x768xi1>, vector<1x768xf32>
    %161 = arith.mulf %158, %121 : vector<1x768xf32>
    %162 = arith.mulf %158, %154 : vector<1x768xf32>
    %cst_59 = arith.constant 0.000000e+00 : f32
    %163 = vector.broadcast %cst_59 : f32 to vector<1x768xf32>
    %164 = arith.select %11, %107, %163 : vector<1x768xi1>, vector<1x768xf32>
    %cst_60 = arith.constant 0.000000e+00 : f32
    %165 = vector.broadcast %cst_60 : f32 to vector<3x768xf32>
    %166 = tpu.concatenate %160, %161, %162, %158, %164, %165 in 0 : vector<1x768xf32>, vector<1x768xf32>, vector<1x768xf32>, vector<1x768xf32>, vector<1x768xf32>, vector<3x768xf32> -> vector<8x768xf32>
    %c0_61 = arith.constant 0 : index
    %c0_62 = arith.constant 0 : index
    %167 = vector.load %arg9[%c0_61, %c0_62] : memref<8x768xf32, #tpu.memory_space<vmem>>, vector<8x768xf32>
    %168 = arith.addf %167, %166 : vector<8x768xf32>
    %c0_63 = arith.constant 0 : index
    %c0_64 = arith.constant 0 : index
    %169 = vector.load %arg9[%c0_63, %c0_64] : memref<8x768xf32, #tpu.memory_space<vmem>>, vector<8x768xf32>
    tpu.vector_store %arg9[%c0_63, %c0_64], %168 {strides = array<i32>} : memref<8x768xf32, #tpu.memory_space<vmem>>, vector<8x768xf32>,
    return
  }
  func.func @transform_0(%arg0: i32, %arg1: i32, %arg2: memref<1xi32, #tpu.memory_space<smem>>) -> (i32, i32) {
    %c1_i32 = arith.constant 1 : i32
    %0 = arith.muli %arg0, %c1_i32 : i32
    %1 = arith.addi %0, %arg1 : i32
    %c0_i32 = arith.constant 0 : i32
    %c0_i32_0 = arith.constant 0 : i32
    return %c0_i32, %1 : i32, i32
  }
  func.func @transform_1(%arg0: i32, %arg1: i32, %arg2: memref<1xi32, #tpu.memory_space<smem>>) -> (i32, i32) {
    %c1_i32 = arith.constant 1 : i32
    %0 = arith.muli %arg0, %c1_i32 : i32
    %1 = arith.addi %0, %arg1 : i32
    %c0_i32 = arith.constant 0 : i32
    %c0_i32_0 = arith.constant 0 : i32
    return %c0_i32, %1 : i32, i32
  }
  func.func @transform_2(%arg0: i32, %arg1: i32, %arg2: memref<1xi32, #tpu.memory_space<smem>>) -> (i32, i32) {
    %c1_i32 = arith.constant 1 : i32
    %0 = arith.muli %arg0, %c1_i32 : i32
    %1 = arith.addi %0, %arg1 : i32
    %c0_i32 = arith.constant 0 : i32
    %c0_i32_0 = arith.constant 0 : i32
    return %c0_i32, %1 : i32, i32
  }
  func.func @transform_3(%arg0: i32, %arg1: i32, %arg2: memref<1xi32, #tpu.memory_space<smem>>) -> (i32, i32) {
    %c1_i32 = arith.constant 1 : i32
    %0 = arith.muli %arg0, %c1_i32 : i32
    %1 = arith.addi %0, %arg1 : i32
    %c0_i32 = arith.constant 0 : i32
    %c0_i32_0 = arith.constant 0 : i32
    return %c0_i32, %1 : i32, i32
  }
  func.func @transform_4(%arg0: i32, %arg1: i32, %arg2: memref<1xi32, #tpu.memory_space<smem>>) -> (i32, i32) {
    %c1_i32 = arith.constant 1 : i32
    %0 = arith.muli %arg0, %c1_i32 : i32
    %1 = arith.addi %0, %arg1 : i32
    %c0_i32 = arith.constant 0 : i32
    %c0_i32_0 = arith.constant 0 : i32
    return %c0_i32, %1 : i32, i32
  }
  func.func @transform_5(%arg0: i32, %arg1: i32, %arg2: memref<1xi32, #tpu.memory_space<smem>>) -> (i32, i32) {
    %c1_i32 = arith.constant 1 : i32
    %0 = arith.muli %arg0, %c1_i32 : i32
    %1 = arith.addi %0, %arg1 : i32
    %c0_i32 = arith.constant 0 : i32
    %c0_i32_0 = arith.constant 0 : i32
    return %c0_i32, %1 : i32, i32
  }
  func.func @transform_6(%arg0: i32, %arg1: i32, %arg2: memref<1xi32, #tpu.memory_space<smem>>) -> (i32, i32) {
    %c0_i32 = arith.constant 0 : i32
    %c0_i32_0 = arith.constant 0 : i32
    return %arg0, %c0_i32 : i32, i32
  }
}

</mosaic_0001>

<bundles_post_ra>
// kernel: tpu_custom_call.1
= control target key start
LH: loop header
LB: loop body
LE: loop exit
PB: predicated region body
PF: predicated region fallthrough
CT: control target
= control target key end

     0   :  { %13 = vsyncpa [#allocation5], 0  ;;  %s1978_s0 = inlined_call_operand.<no memory space> [shape: s32[1], index: 0, kind: input, shape index: {}]   ;;  %s1979_s1 = inlined_call_operand.hbm [shape: f32[16,768], index: 1, kind: input, shape index: {}]   ;;  %s1980_s2 = inlined_call_operand.hbm [shape: f32[16,768], index: 2, kind: input, shape index: {}]   ;;  %s1981_s3 = inlined_call_operand.hbm [shape: f32[5,768], index: 3, kind: input, shape index: {}]   ;;  %s1982_s4 = inlined_call_operand.vmem [shape: f32[1,768], index: 4, kind: input, shape index: {}]   ;;  %s1983_s5 = inlined_call_operand.hbm [shape: f32[5,768], index: 5, kind: input, shape index: {}]   ;;  %s1984_s6 = inlined_call_operand.vmem [shape: f32[1,768], index: 6, kind: input, shape index: {}]   ;;  %s1985_s7 = inlined_call_operand.hbm [shape: f32[8,768], index: 7, kind: output, shape index: {}]  }
   0x1   :  { %14 = vsyncpa [#allocation8], 0 }
   0x2   :  { %15 = vsyncpa [#allocation11], 0 }
   0x3   :  { %16 = vsyncpa [#allocation6], 0  ;;  %s1439_s24 = smov [#allocation7]   ;;  %s1440_s26 = smov [#allocation4]  }
   0x4   :  { %s42_s25 = sshll.u32 %s1439_s24, 4  ;;  %s26_s27 = sshll.u32 %s1440_s26, 4  ;;  %s43_s25 = int_to_ptr.vmem [resolvable:$true] %s42_s25  ;;  %s1486_s27 = int_to_ptr.vmem [resolvable:$true] %s26_s27 }
   0x5   :  { %s1321_s30 = scalar_lea.hbm %s1980_s2, 1536 }
   0x6   :  { %p1322_p0 = scmp.ne.s32.totalorder %s1980_s2, %s1321_s30  ;;  %p1325_p1 = scmp.lt.u32.totalorder %s1321_s30, %s1980_s2 }
   0x8   :  { %p1327_p2 = pnand %p1325_p1, %p1322_p0 }
   0xa   :  { %1330 = shalt.err (!%p1327_p2)
}
   0xb   :  { %s1331_s12 = scalar_lea.vmem %s43_s25, 1536  ;;  %p1336_p4 = scmp.lt.s32.totalorder %s43_s25, %s43_s25 }
   0xc   :  { %p1332_p3 = scmp.ne.s32.totalorder %s43_s25, %s1331_s12  ;;  %p1337_p5 = scmp.lt.s32.totalorder %s1331_s12, %s1331_s12 }
   0xe   :  { %p1338_p6 = por %p1337_p5, %p1336_p4 }
  0x10   :  { %p1339_p7 = pnand %p1338_p6, %p1332_p3 }
  0x12   :  { %1342 = shalt.err (!%p1339_p7)
}
  0x13   :  { %s1441_s13 = smov 768   ;;  %s1442_s14 = smov 48  }
  0x14   :  { %48 = dma.hbm_to_vmem [thread:$0]  %s1980_s2, 1536, %s43_s25, [#allocation8], %s1441_s13, %s1441_s13, %s1442_s14  }
  0x15   :  { %s1343_s19 = scalar_lea.hbm %s1979_s1, 1536 }
  0x16   :  { %p1344_p8 = scmp.ne.s32.totalorder %s1979_s1, %s1343_s19  ;;  %p1347_p9 = scmp.lt.u32.totalorder %s1343_s19, %s1979_s1 }
  0x18   :  { %p1349_p10 = pnand %p1347_p9, %p1344_p8 }
  0x1a   :  { %1352 = shalt.err (!%p1349_p10)
}
  0x1b   :  { %s1353_s24 = scalar_lea.vmem %s1486_s27, 1536  ;;  %p1358_p12 = scmp.lt.s32.totalorder %s1486_s27, %s1486_s27 }
  0x1c   :  { %p1354_p11 = scmp.ne.s32.totalorder %s1486_s27, %s1353_s24  ;;  %p1359_p13 = scmp.lt.s32.totalorder %s1353_s24, %s1353_s24 }
  0x1e   :  { %p1360_p0 = por %p1359_p13, %p1358_p12 }
  0x20   :  { %p1361_p1 = pnand %p1360_p0, %p1354_p11 }
  0x22   :  { %1364 = shalt.err (!%p1361_p1)
}
  0x23   :  { %32 = dma.hbm_to_vmem [thread:$0]  %s1979_s1, 1536, %s1486_s27, [#allocation5], %s1441_s13, %s1441_s13, %s1442_s14  }
  0x24   :  { %s1443_s26 = smov [#allocation9]   ;;  %s1444_s29 = smov [#allocation10]  }
  0x25   :  { %s59_s28 = sshll.u32 %s1443_s26, 4  ;;  %s82_s30 = sshll.u32 %s1444_s29, 4  ;;  %s60_s28 = int_to_ptr.vmem [resolvable:$true] %s59_s28  ;;  %s83_s30 = int_to_ptr.vmem [resolvable:$true] %s82_s30 }
  0x26   :  { %s1365_s10 = scalar_lea.hbm %s1981_s3, 768 }
  0x27   :  { %p1366_p2 = scmp.ne.s32.totalorder %s1981_s3, %s1365_s10  ;;  %p1369_p3 = scmp.lt.u32.totalorder %s1365_s10, %s1981_s3 }
  0x29   :  { %p1371_p4 = pnand %p1369_p3, %p1366_p2 }
  0x2b   :  { %1374 = shalt.err (!%p1371_p4)
}
  0x2c   :  { %s1375_s1 = scalar_lea.vmem %s60_s28, 768  ;;  %p1380_p6 = scmp.lt.s32.totalorder %s60_s28, %s60_s28 }
  0x2d   :  { %p1376_p5 = scmp.ne.s32.totalorder %s60_s28, %s1375_s1  ;;  %p1381_p7 = scmp.lt.s32.totalorder %s1375_s1, %s1375_s1 }
  0x2f   :  { %p1382_p8 = por %p1381_p7, %p1380_p6 }
  0x31   :  { %p1383_p9 = pnand %p1382_p8, %p1376_p5 }
  0x33   :  { %1386 = shalt.err (!%p1383_p9)
}
  0x34   :  { %62 = dma.hbm_to_vmem [thread:$0]  %s1981_s3, 768, %s60_s28, [#allocation8]  }
  0x35   :  { %s1387_s18 = scalar_lea.hbm %s1983_s5, 768 }
  0x36   :  { %p1388_p10 = scmp.ne.s32.totalorder %s1983_s5, %s1387_s18  ;;  %p1391_p11 = scmp.lt.u32.totalorder %s1387_s18, %s1983_s5 }
  0x38   :  { %p1393_p12 = pnand %p1391_p11, %p1388_p10 }
  0x3a   :  { %1396 = shalt.err (!%p1393_p12)
}
  0x3b   :  { %s1397_s23 = scalar_lea.vmem %s83_s30, 768  ;;  %p1402_p0 = scmp.lt.s32.totalorder %s83_s30, %s83_s30 }
  0x3c   :  { %p1398_p13 = scmp.ne.s32.totalorder %s83_s30, %s1397_s23  ;;  %p1403_p1 = scmp.lt.s32.totalorder %s1397_s23, %s1397_s23 }
  0x3e   :  { %p1404_p2 = por %p1403_p1, %p1402_p0 }
  0x40   :  { %p1405_p3 = pnand %p1404_p2, %p1398_p13 }
  0x42   :  { %1408 = shalt.err (!%p1405_p3)
}
  0x43   :  { %85 = dma.hbm_to_vmem [thread:$0]  %s1983_s5, 768, %s83_s30, [#allocation11]  }
  0x44   :  { %1431 = dma.done.wait [#allocation5], 1536  }
  0x45   :  { %1432 = vsyncadd [#allocation5], 4294965760 }
  0x46   :  { %1433 = dma.done.wait [#allocation8], 2304  }
  0x47   :  { %1434 = vsyncadd [#allocation8], 4294964992 }
  0x48   :  { %1435 = dma.done.wait [#allocation11], 768  }
  0x49   :  { %1436 = vsyncadd [#allocation11], 4294966528  ;;  %v151_v0 = vlaneseq  ;;  %v173_v2 = vld [vmem:[#allocation4] sm:$0xff]  ;;  %v473_v4 = vld [vmem:[#allocation4 + $0x30] sm:$0xff]  ;;  %vm827_vm0 = vcmask 1044480   ;;  %v1587_v54 = vstv %s1978_s0  ;;  %vm1055_vm4 = vcmask 1040384  }
  0x4a   :  { %v1543_v3 = vld [vmem:[#allocation7] sm:$0xff]  ;;  %v1130_v6 = vmul.f32 -1.442695, %v173_v2  ;;  %v1550_v10 = vld [vmem:[#allocation7 + $0x30] sm:$0xff]  ;;  %v1142_v11 = vmul.f32 -1.442695, %v473_v4 }
  0x4b   :  { %v1541_v1 = vand.u32 127, %v151_v0  ;;  %v1545_v5 = vshrl.u32 %v151_v0, 7  ;;  %v1136_v7 = vmul.f32 -1.442695, %v1543_v3  ;;  %v257_v8 = vand.u32 2147483647, %v1543_v3 }
  0x4c   :  { %v317_v9 = vsub.f32 0.0, %v1543_v3  ;;  %1169 = vpow2.f32 %v1130_v6  ;;  %v1148_v13 = vmul.f32 -1.442695, %v1550_v10  ;;  %v557_v14 = vand.u32 2147483647, %v1550_v10  ;;  %v174_v27 = vld [vmem:[#allocation4 + $0x8] sm:$0xff] }
  0x4d   :  { %v263_v12 = vsub.f32 0.0, %v257_v8  ;;  %1171 = vpow2.f32 %v1136_v7  ;;  %v773_v15 = vld [vmem:[#allocation10] sm:$0x1f]  ;;  %v900_v16 = vsub.s32 0, %v1545_v5  ;;  %v1556_v17 = vadd.s32 128, %v1541_v1  ;;  %v1573_v35 = vld [vmem:[#allocation7 + $0x8] sm:$0xff] }
  0x4e   :  { %v904_v18 = vsub.s32 1, %v1545_v5  ;;  %v299_v20 = vmin.f32 %v1543_v3, 0.0  ;;  %1173 = vpow2.f32 %v1142_v11  ;;  %v563_v21 = vsub.f32 0.0, %v557_v14  ;;  %v779_v22 = vld [vmem:[#allocation9] sm:$0x1f]  ;;  %v474_v39 = vld [vmem:[#allocation4 + $0x38] sm:$0xff] }
  0x4f   :  { %v269_v19 = vmul.f32 1.442695, %v263_v12  ;;  %v1560_v23 = vmin.f32 %v317_v9, 0.0  ;;  %1175 = vpow2.f32 %v1148_v13  ;;  %v785_v24 = vsub.f32 %v773_v15, %v779_v22  ;;  %v870_v25 = vld [vmem:[%s1982_s4] sm:$0x3f]  ;;  %v1580_v47 = vld [vmem:[#allocation7 + $0x38] sm:$0xff] }
  0x50   :  { %v1568_v26 = vld [vmem:[%s1984_s6] sm:$0x3f]  ;;  %v569_v28 = vmul.f32 1.442695, %v563_v21  ;;  %v1160_v29 = vmul.f32 -1.442695, %v870_v25  ;;  %vm167_vm3 = vcmp.lt.s32.totalorder %v1541_v1, %v1587_v54  ;;  %vm168_vm8 = vcmp.lt.s32.totalorder %v1556_v17, %v1587_v54 }
  0x51   :  { %1177 = vpow2.f32 %v269_v19  ;;  %v878_v30 = vand.u32 2147483647, %v1568_v26  ;;  %v599_v31 = vmin.f32 %v1550_v10, 0.0  ;;  %v617_v32 = vsub.f32 0.0, %v1550_v10  ;;  %v774_v57 = vld [vmem:[#allocation10 + $0x8] sm:$0x1f] }
  0x52   :  { %v791_v33 = vand.u32 2147483647, %v785_v24  ;;  %v803_v34 = vmul.f32 0.5, %v785_v24  ;;  %1179 = vpow2.f32 %v569_v28  ;;  %v1131_v37 = vmul.f32 -1.442695, %v174_v27  ;;  %v1595_v28 = vld [vmem:[#allocation7 + $0x10] sm:$0xff] }
  0x53   :  { %v879_v36 = vsub.f32 0.0, %v878_v30  ;;  %v1137_v38 = vmul.f32 -1.442695, %v1573_v35  ;;  %1181 = vpow2.f32 %v1160_v29  ;;  %v258_v43 = vand.u32 2147483647, %v1573_v35  ;;  %s1445_s0 = smov [#allocation12]  }
  0x54   :  { %vm797_vm1 = vcmp.lt.f32.partialorder %v791_v33, 1.0  ;;  %v809_v40 = vmul.f32 %v803_v34, %v785_v24  ;;  %v1154_v41 = vadd.f32 -0.5, %v791_v33  ;;  %1183 = vpow2.f32 %v1131_v37  ;;  %v780_v58 = vld [vmem:[#allocation9 + $0x8] sm:$0x1f]  ;;  %s1113_s28 = sshll.u32 %s1445_s0, 4  ;;  %s1114_s28 = int_to_ptr.vmem [resolvable:$true] %s1113_s28 }
  0x55   :  { %v880_v42 = vmul.f32 1.442695, %v879_v36  ;;  %v300_v44 = vmin.f32 %v1573_v35, 0.0  ;;  %v1578_v45 = vmin.f32 %v617_v32, 0.0  ;;  %1185 = vpow2.f32 %v1137_v38  ;;  %s1409_s29 = scalar_lea.vmem %s1114_s28, 768  ;;  %p1414_p5 = scmp.lt.s32.totalorder %s1114_s28, %s1114_s28 }
  0x56   :  { %v821_v46 = vsel %vm797_vm1, %v809_v40, %v1154_v41  ;;  %v1143_v48 = vmul.f32 -1.442695, %v474_v39  ;;  %v1170_v49 = vpop.eup %1169  ;;  %v264_v51 = vsub.f32 0.0, %v258_v43  ;;  %v1149_v52 = vmul.f32 -1.442695, %v1580_v47  ;;  %p1410_p4 = scmp.ne.s32.totalorder %s1114_s28, %s1409_s29  ;;  %p1415_p6 = scmp.lt.s32.totalorder %s1409_s29, %s1409_s29 }
  0x57   :  { %v828_v50 = vsel %vm827_vm0, %v821_v46, 0.0  ;;  %1187 = vpow2.f32 %v880_v42  ;;  %v1172_v53 = vpop.eup %1171  ;;  %v203_v55 = vadd.f32 1.0, %v1170_v49  ;;  %v888_v61 = vsub.f32 0.0, %v1568_v26 }
  0x58   :  { %v829_v56 = vrot.slane %v828_v50, 4  ;;  %1189 = vpow2.f32 %v1143_v48  ;;  %v1174_v59 = vpop.eup %1173  ;;  %v239_v60 = vadd.f32 1.0, %v1172_v53  ;;  %v318_v62 = vsub.f32 0.0, %v1573_v35  ;;  %p1416_p7 = por %p1415_p6, %p1414_p5 }
  0x59   :  { %1191 = vpow2.f32 %v1149_v52  ;;  %v1176_v63 = vpop.eup %1175  ;;  %v503_v0 = vadd.f32 1.0, %v1174_v59  ;;  %v558_v4 = vand.u32 2147483647, %v1580_v47  ;;  %v271_v8 = vmul.f32 1.442695, %v264_v51  ;;  %v175_v51 = vld [vmem:[#allocation4 + $0x10] sm:$0xff] }
  0x5a   :  { %1193 = vrcp.f32 %v203_v55  ;;  %v830_v2 = vadd.f32 %v829_v56, %v828_v50  ;;  %v539_v7 = vadd.f32 1.0, %v1176_v63  ;;  %v786_v9 = vsub.f32 %v774_v57, %v780_v58  ;;  %p1417_p8 = pnand %p1416_p7, %p1410_p4 }
  0x5b   :  { %v1178_v6 = vpop.eup %1177  ;;  %1195 = vrcp.f32 %v239_v60  ;;  %v885_v13 = vmin.f32 %v1568_v26, 0.0  ;;  %v1593_v15 = vmin.f32 %v888_v61, 0.0  ;;  %v564_v27 = vsub.f32 0.0, %v558_v4 }
  0x5c   :  { %v281_v11 = vadd.f32 1.0, %v1178_v6  ;;  %1197 = vrcp.f32 %v503_v0  ;;  %v831_v12 = vrot.slane %v830_v2, 2  ;;  %v1180_v14 = vpop.eup %1179  ;;  %v792_v19 = vand.u32 2147483647, %v786_v9 }
  0x5d   :  { %1199 = vrcp.f32 %v539_v7  ;;  %v804_v21 = vmul.f32 0.5, %v786_v9  ;;  %v1182_v22 = vpop.eup %1181  ;;  %v581_v24 = vadd.f32 1.0, %v1180_v14  ;;  %v1601_v37 = vmin.f32 %v318_v62, 0.0 }
  0x5e   :  { %1201 = vlog2.f32 %v281_v11  ;;  %v832_v25 = vadd.f32 %v831_v12, %v830_v2  ;;  %v1184_v29 = vpop.eup %1183  ;;  %v875_v30 = vadd.f32 1.0, %v1182_v22  ;;  %vm1597_vm2 = vcmp.lt.f32.partialorder %v792_v19, 1.0 }
  0x5f   :  { %1203 = vpow2.f32 %v271_v8  ;;  %v810_v33 = vmul.f32 %v804_v21, %v786_v9  ;;  %v1186_v34 = vpop.eup %1185  ;;  %v204_v36 = vadd.f32 1.0, %v1184_v29  ;;  %v1155_v38 = vadd.f32 -0.5, %v792_v19 }
  0x60   :  { %1205 = vlog2.f32 %v581_v24  ;;  %v240_v40 = vadd.f32 1.0, %v1186_v34  ;;  %v618_v41 = vsub.f32 0.0, %v1580_v47  ;;  %v259_v42 = vand.u32 2147483647, %v1595_v28 }
  0x61   :  { %v1188_v39 = vpop.eup %1187  ;;  %1207 = vrcp.f32 %v875_v30  ;;  %v833_v46 = vrot.slane %v832_v25, 1  ;;  %v600_v49 = vmin.f32 %v1580_v47, 0.0  ;;  %v822_v50 = vsel %vm1597_vm2, %v810_v33, %v1155_v38 }
  0x62   :  { %v1190_v43 = vpop.eup %1189  ;;  %v882_v48 = vadd.f32 1.0, %v1188_v39  ;;  %1209 = vrcp.f32 %v204_v36  ;;  %v571_v55 = vmul.f32 1.442695, %v564_v27  ;;  %v835_v56 = vsel %vm827_vm0, %v822_v50, 0.0 }
  0x63   :  { %v1192_v52 = vpop.eup %1191  ;;  %v504_v53 = vadd.f32 1.0, %v1190_v43  ;;  %v836_v59 = vrot.slane %v835_v56, 4  ;;  %v265_v60 = vsub.f32 0.0, %v259_v42  ;;  %v1609_v63 = vmin.f32 %v618_v41, 0.0 }
  0x64   :  { %v1194_v57 = vpop.eup %1193  ;;  %1211 = vlog2.f32 %v882_v48  ;;  %v540_v58 = vadd.f32 1.0, %v1192_v52  ;;  %v1132_v0 = vmul.f32 -1.442695, %v175_v51  ;;  %v1611_v4 = vadd.f32 %v833_v46, %v832_v25 }
  0x65   :  { %v1196_v61 = vpop.eup %1195  ;;  %v431_v62 = vrot.slane %v1194_v57, 4  ;;  %1213 = vrcp.f32 %v240_v40  ;;  %v837_v6 = vadd.f32 %v836_v59, %v835_v56  ;;  %v1138_v7 = vmul.f32 -1.442695, %v1595_v28 }
  0x66   :  { %v1198_v2 = vpop.eup %1197  ;;  %1215 = vrcp.f32 %v504_v53  ;;  %v347_v9 = vsub.f32 1.0, %v1194_v57  ;;  %v371_v19 = vsub.f32 %v1194_v57, %v1196_v61  ;;  %v273_v22 = vmul.f32 1.442695, %v265_v60 }
  0x67   :  { %v1200_v8 = vpop.eup %1199  ;;  %v432_v11 = vmax.f32 %v1194_v57, %v431_v62  ;;  %v731_v12 = vrot.slane %v1198_v2, 4  ;;  %1217 = vpow2.f32 %v571_v55  ;;  %v647_v32 = vsub.f32 1.0, %v1198_v2 }
  0x68   :  { %v1202_v14 = vpop.eup %1201  ;;  %v671_v21 = vsub.f32 %v1198_v2, %v1200_v8  ;;  %1219 = vrcp.f32 %v540_v58  ;;  %v838_v34 = vrot.slane %v837_v6, 2  ;;  %v377_v42 = vmul.f32 %v371_v19, %v371_v19 }
  0x69   :  { %v1204_v24 = vpop.eup %1203  ;;  %v288_v27 = vmul.f32 0.6931472, %v1202_v14  ;;  %v433_v29 = vrot.slane %v432_v11, 2  ;;  %v732_v30 = vmax.f32 %v1198_v2, %v731_v12  ;;  %1221 = vpow2.f32 %v1132_v0 }
  0x6a   :  { %v1206_v25 = vpop.eup %1205  ;;  %v282_v33 = vadd.f32 1.0, %v1204_v24  ;;  %1223 = vpow2.f32 %v1138_v7  ;;  %v677_v43 = vmul.f32 %v671_v21, %v671_v21  ;;  %v1625_v56 = vadd.f32 %v838_v34, %v837_v6 }
  0x6b   :  { %v1614_v36 = vpop.eup %1207  ;;  %v305_v38 = vsub.f32 %v299_v20, %v288_v27  ;;  %v329_v39 = vsub.f32 %v1560_v23, %v288_v27  ;;  %v434_v40 = vmax.f32 %v432_v11, %v433_v29  ;;  %v588_v41 = vmul.f32 0.6931472, %v1206_v25 }
  0x6c   :  { %v733_v46 = vrot.slane %v732_v30, 2  ;;  %1225 = vlog2.f32 %v282_v33  ;;  %v1619_v48 = vpop.eup %1209  ;;  %v893_v23 = vsub.f32 1.0, %v1614_v36  ;;  %vm1062_vm5 = vcmask 1041408  }
  0x6d   :  { %v311_v50 = vmax.f32 %v305_v38, -100.0  ;;  %v335_v51 = vmax.f32 %v329_v39, -100.0  ;;  %v435_v52 = vrot.slane %v434_v40, 1  ;;  %v605_v53 = vsub.f32 %v599_v31, %v588_v41 }
  0x6e   :  { %v1212_v55 = vpop.eup %1211  ;;  %v629_v3 = vsub.f32 %v1578_v45, %v588_v41  ;;  %v734_v20 = vmax.f32 %v732_v30, %v733_v46  ;;  %v901_v45 = vrot.slane %v1614_v36, %v900_v16  ;;  %v437_v14 = vrot.slane %v1619_v48, 4 }
  0x6f   :  { %v1214_v58 = vpop.eup %1213  ;;  %v341_v59 = vmul.f32 %v1194_v57, %v311_v50  ;;  %v353_v60 = vmul.f32 %v347_v9, %v335_v51  ;;  %v436_v61 = vmax.f32 %v434_v40, %v435_v52  ;;  %v611_v62 = vmax.f32 %v605_v53, -100.0 }
  0x70   :  { %v1629_v0 = vpop.eup %1215  ;;  %v635_v10 = vmax.f32 %v629_v3, -100.0  ;;  %v735_v31 = vrot.slane %v734_v20, 1  ;;  %v884_v7 = vmul.f32 0.6931472, %v1212_v55  ;;  %v438_v30 = vmax.f32 %v1619_v48, %v437_v14 }
  0x71   :  { %v1218_v8 = vpop.eup %1217  ;;  %v359_v6 = vadd.f32 %v353_v60, %v341_v59  ;;  %v467_v11 = vmax.f32 %v436_v61, 0.0  ;;  %v641_v12 = vmul.f32 %v1198_v2, %v611_v62  ;;  %1227 = vpow2.f32 %v273_v22 }
  0x72   :  { %v1220_v19 = vpop.eup %1219  ;;  %v653_v57 = vmul.f32 %v647_v32, %v635_v10  ;;  %v736_v9 = vmax.f32 %v734_v20, %v735_v31  ;;  %v886_v21 = vsub.f32 %v885_v13, %v884_v7  ;;  %v890_v24 = vsub.f32 %v1593_v15, %v884_v7 }
  0x73   :  { %v1638_v27 = vpop.eup %1221  ;;  %v365_v29 = vsub.f32 0.0, %v359_v6  ;;  %v582_v25 = vadd.f32 1.0, %v1218_v8  ;;  %v348_v26 = vsub.f32 1.0, %v1619_v48  ;;  %v439_v13 = vrot.slane %v438_v30, 2 }
  0x74   :  { %v1641_v33 = vpop.eup %1223  ;;  %v659_v2 = vadd.f32 %v653_v57, %v641_v12  ;;  %v1643_v34 = vmax.f32 %v467_v11, %v736_v9  ;;  %v887_v38 = vmax.f32 %v886_v21, -100.0  ;;  %v891_v32 = vmax.f32 %v890_v24, -100.0 }
  0x75   :  { %v383_v39 = vmul.f32 %v377_v42, %v365_v29  ;;  %1229 = vlog2.f32 %v582_v25  ;;  %v372_v52 = vsub.f32 %v1619_v48, %v1214_v58  ;;  %v440_v53 = vmax.f32 %v438_v30, %v439_v13 }
  0x76   :  { %v1226_v15 = vpop.eup %1225  ;;  %v665_v40 = vsub.f32 0.0, %v659_v2  ;;  %v892_v41 = vmul.f32 %v1614_v36, %v887_v38  ;;  %v894_v46 = vmul.f32 %v893_v23, %v891_v32  ;;  %v928_v50 = vmul.f32 %v901_v45, %v1643_v34 }
  0x77   :  { %v389_v22 = vrot.slane %v383_v39, 4  ;;  %v290_v51 = vmul.f32 0.6931472, %v1226_v15  ;;  %v672_v42 = vsub.f32 %v1629_v0, %v1220_v19  ;;  %v441_v62 = vrot.slane %v440_v53, 1 }
  0x78   :  { %v683_v55 = vmul.f32 %v677_v43, %v665_v40  ;;  %v895_v3 = vadd.f32 %v894_v46, %v892_v41  ;;  %v934_v20 = vmul.f32 %v928_v50, %v928_v50  ;;  %v737_v43 = vrot.slane %v1629_v0, 4 }
  0x79   :  { %v390_v59 = vadd.f32 %v389_v22, %v383_v39  ;;  %v306_v60 = vsub.f32 %v300_v44, %v290_v51  ;;  %v330_v61 = vsub.f32 %v1601_v37, %v290_v51  ;;  %v378_v44 = vmul.f32 %v372_v52, %v372_v52  ;;  %v475_v51 = vld [vmem:[#allocation4 + $0x40] sm:$0xff] }
  0x7a   :  { %v689_v23 = vrot.slane %v683_v55, 4  ;;  %v1653_v10 = vsub.f32 0.0, %v895_v3  ;;  %v1658_v58 = vsel %vm167_vm3, %v934_v20, 0.0  ;;  %v442_v6 = vmax.f32 %v440_v53, %v441_v62 }
  0x7b   :  { %v391_v31 = vrot.slane %v390_v59, 2  ;;  %v1663_v7 = vmul.f32 %v1658_v58, %v1611_v4  ;;  %v312_v35 = vmax.f32 %v306_v60, -100.0  ;;  %v336_v8 = vmax.f32 %v330_v61, -100.0  ;;  %v1228_v11 = vpop.eup %1227  ;;  %v1687_v61 = vld [vmem:[#allocation7 + $0x40] sm:$0xff] }
  0x7c   :  { %v690_v45 = vadd.f32 %v689_v23, %v683_v55  ;;  %v962_v37 = vrot.slane %v1653_v10, %v900_v16  ;;  %v648_v19 = vsub.f32 1.0, %v1629_v0  ;;  %v738_v57 = vmax.f32 %v1629_v0, %v737_v43 }
  0x7d   :  { %v392_v12 = vadd.f32 %v391_v31, %v390_v59  ;;  %v342_v14 = vmul.f32 %v1619_v48, %v312_v35  ;;  %v1043_v4 = vrot.slane %v1658_v58, 5  ;;  %v354_v21 = vmul.f32 %v348_v26, %v336_v8 }
  0x7e   :  { %v691_v9 = vrot.slane %v690_v45, 2  ;;  %v1672_v24 = vmul.f32 %v672_v42, %v672_v42  ;;  %v989_v16 = vmul.f32 %v962_v37, %v1658_v58  ;;  %v1007_v25 = vrot.slane %v1663_v7, 7 }
  0x7f   :  { %v1230_v29 = vpop.eup %1229  ;;  %v393_v30 = vrot.slane %v392_v12, 1  ;;  %v739_v2 = vrot.slane %v738_v57, 2  ;;  %vm1069_vm6 = vcmask 1042432   ;;  %v360_v38 = vadd.f32 %v354_v21, %v342_v14  ;;  %v781_v14 = vld [vmem:[#allocation9 + $0x10] sm:$0x1f] }
  0x80   :  { %v692_v48 = vadd.f32 %v691_v9, %v690_v45  ;;  %v468_v32 = vmax.f32 %v442_v6, 0.0  ;;  %v590_v39 = vmul.f32 0.6931472, %v1230_v29  ;;  %vm1076_vm7 = vcmask 1043456  }
  0x81   :  { %v394_v13 = vadd.f32 %v393_v30, %v392_v12  ;;  %v740_v15 = vmax.f32 %v738_v57, %v739_v2  ;;  %v840_v26 = vrot.slane %v1625_v56, 1  ;;  %v905_v40 = vrot.slane %v1614_v36, %v904_v18  ;;  %v775_v12 = vld [vmem:[#allocation10 + $0x10] sm:$0x1f] }
  0x82   :  { %v693_v41 = vrot.slane %v692_v48, 1  ;;  %v366_v46 = vsub.f32 0.0, %v360_v38  ;;  %v606_v50 = vsub.f32 %v600_v49, %v590_v39  ;;  %v630_v22 = vsub.f32 %v1609_v63, %v590_v39 }
  0x83   :  { %v741_v52 = vrot.slane %v740_v15, 1  ;;  %v205_v53 = vadd.f32 1.0, %v1638_v27  ;;  %v241_v55 = vadd.f32 1.0, %v1641_v33  ;;  %v283_v3 = vadd.f32 1.0, %v1228_v11 }
  0x84   :  { %v694_v20 = vadd.f32 %v693_v41, %v692_v48  ;;  %v384_v42 = vmul.f32 %v378_v44, %v366_v46  ;;  %v612_v59 = vmax.f32 %v606_v50, -100.0  ;;  %v636_v60 = vmax.f32 %v630_v22, -100.0 }
  0x85   :  { %v1025_v62 = vrot.slane %v989_v16, 6  ;;  %v742_v23 = vmax.f32 %v740_v15, %v741_v52  ;;  %1231 = vrcp.f32 %v205_v53  ;;  %v1144_v47 = vmul.f32 -1.442695, %v475_v51 }
  0x86   :  { %v725_v49 = vadd.f32 %v694_v20, %v394_v13  ;;  %v395_v58 = vrot.slane %v384_v42, 4  ;;  %v642_v63 = vmul.f32 %v1629_v0, %v612_v59  ;;  %v654_v43 = vmul.f32 %v648_v19, %v636_v60  ;;  %v176_v59 = vld [vmem:[#allocation4 + $0x18] sm:$0xff] }
  0x87   :  { %v1690_v31 = vmax.f32 %v468_v32, %v742_v23  ;;  %1233 = vrcp.f32 %v241_v55  ;;  %v1150_v27 = vmul.f32 -1.442695, %v1687_v61  ;;  %v559_v33 = vand.u32 2147483647, %v1687_v61 }
  0x88   :  { %v946_v7 = vsel %vm167_vm3, %v725_v49, 0.0  ;;  %v396_v35 = vadd.f32 %v395_v58, %v384_v42  ;;  %v660_v44 = vadd.f32 %v654_v43, %v642_v63  ;;  %1235 = vlog2.f32 %v283_v3 }
  0x89   :  { %v995_v0 = vsel %vm167_vm3, %v1643_v34, 0.0  ;;  %v1056_v45 = vsel %vm1055_vm4, %v946_v7, %v1007_v25  ;;  %v929_v37 = vmul.f32 %v905_v40, %v1690_v31  ;;  %1237 = vpow2.f32 %v1144_v47 }
  0x8a   :  { %v1063_v8 = vsel %vm1062_vm5, %v1056_v45, %v1025_v62  ;;  %v397_v6 = vrot.slane %v396_v35, 2  ;;  %v666_v11 = vsub.f32 0.0, %v660_v44  ;;  %1239 = vpow2.f32 %v1150_v27 }
  0x8b   :  { %v1070_v19 = vsel %vm1069_vm6, %v1063_v8, %v1043_v4  ;;  %v935_v57 = vmul.f32 %v929_v37, %v929_v37  ;;  %v319_v9 = vsub.f32 0.0, %v1595_v28  ;;  %v565_v21 = vsub.f32 0.0, %v559_v33  ;;  %v1728_v8 = vld [vmem:[#allocation7 + $0x18] sm:$0xff] }
  0x8c   :  { %v1077_v34 = vsel %vm1076_vm7, %v1070_v19, %v995_v0  ;;  %v398_v29 = vadd.f32 %v397_v6, %v396_v35  ;;  %v684_v30 = vmul.f32 %v1672_v24, %v666_v11  ;;  %v841_v16 = vadd.f32 %v840_v26, %v1625_v56 }
  0x8d   :  { %v1083_v25 = vsel %vm827_vm0, %v1077_v34, 0.0  ;;  %v1713_v2 = vsel %vm168_vm8, %v935_v57, 0.0  ;;  %v573_v48 = vmul.f32 1.442695, %v565_v21  ;;  %v787_v4 = vsub.f32 %v775_v12, %v781_v14 }
  0x8e   :  { %v399_v38 = vrot.slane %v398_v29, 1  ;;  %v695_v32 = vrot.slane %v684_v30, 4  ;;  %v966_v39 = vrot.slane %v1653_v10, %v904_v18  ;;  %1101 = vst [vmem:[#allocation12] sm:$0xff] %v1083_v25  ;;  %v953_v56 = vmul.f32 %v1713_v2, %v841_v16 }
  0x8f   :  { %v1232_v13 = vpop.eup %1231  ;;  %1241 = vpow2.f32 %v573_v48  ;;  %v301_v15 = vmin.f32 %v1595_v28, 0.0  ;;  %v325_v40 = vmin.f32 %v319_v9, 0.0  ;;  %v793_v46 = vand.u32 2147483647, %v787_v4  ;;  %v476_v48 = vld [vmem:[#allocation4 + $0x48] sm:$0xff] }
  0x90   :  { %v696_v24 = vadd.f32 %v695_v32, %v684_v30  ;;  %v443_v41 = vrot.slane %v1232_v13, 4  ;;  %v805_v50 = vmul.f32 0.5, %v787_v4  ;;  %v400_v51 = vadd.f32 %v399_v38, %v398_v29 }
  0x91   :  { %v1234_v26 = vpop.eup %1233  ;;  %v990_v53 = vmul.f32 %v966_v39, %v1713_v2  ;;  %v1044_v18 = vrot.slane %v1713_v2, 5  ;;  %vm1722_vm9 = vcmp.lt.f32.partialorder %v793_v46, 1.0  ;;  %v1008_v23 = vrot.slane %v953_v56, 7  ;;  %v1742_v56 = vld [vmem:[#allocation7 + $0x48] sm:$0xff] }
  0x92   :  { %v1236_v22 = vpop.eup %1235  ;;  %v697_v52 = vrot.slane %v696_v24, 2  ;;  %v444_v20 = vmax.f32 %v1232_v13, %v443_v41  ;;  %v811_v28 = vmul.f32 %v805_v50, %v787_v4  ;;  %v1156_v49 = vadd.f32 -0.5, %v793_v46 }
  0x93   :  { %v1238_v55 = vpop.eup %1237  ;;  %v292_v3 = vmul.f32 0.6931472, %v1236_v22  ;;  %v349_v43 = vsub.f32 1.0, %v1232_v13  ;;  %v1133_v35 = vmul.f32 -1.442695, %v176_v59  ;;  %v373_v45 = vsub.f32 %v1232_v13, %v1234_v26 }
  0x94   :  { %v1240_v60 = vpop.eup %1239  ;;  %v698_v62 = vadd.f32 %v697_v52, %v696_v24  ;;  %v505_v47 = vadd.f32 1.0, %v1238_v55  ;;  %v445_v27 = vrot.slane %v444_v20, 2  ;;  %v823_v7 = vsel %vm1722_vm9, %v811_v28, %v1156_v49 }
  0x95   :  { %v307_v58 = vsub.f32 %v301_v15, %v292_v3  ;;  %v331_v63 = vsub.f32 %v325_v40, %v292_v3  ;;  %v541_v37 = vadd.f32 1.0, %v1240_v60  ;;  %v842_v11 = vsel %vm827_vm0, %v823_v7, 0.0  ;;  %v776_v60 = vld [vmem:[#allocation10 + $0x18] sm:$0x1f] }
  0x96   :  { %v699_v33 = vrot.slane %v698_v62, 1  ;;  %1243 = vrcp.f32 %v505_v47  ;;  %v1139_v12 = vmul.f32 -1.442695, %v1728_v8  ;;  %v1026_v19 = vrot.slane %v990_v53, 6 }
  0x97   :  { %v313_v44 = vmax.f32 %v307_v58, -100.0  ;;  %v337_v0 = vmax.f32 %v331_v63, -100.0  ;;  %1245 = vpow2.f32 %v1133_v35  ;;  %v446_v21 = vmax.f32 %v444_v20, %v445_v27  ;;  %v782_v58 = vld [vmem:[#allocation9 + $0x18] sm:$0x1f] }
  0x98   :  { %v700_v6 = vadd.f32 %v699_v33, %v698_v62  ;;  %1247 = vpow2.f32 %v1139_v12  ;;  %v260_v30 = vand.u32 2147483647, %v1728_v8  ;;  %v379_v25 = vmul.f32 %v373_v45, %v373_v45 }
  0x99   :  { %v1242_v14 = vpop.eup %1241  ;;  %v343_v57 = vmul.f32 %v1232_v13, %v313_v44  ;;  %v355_v9 = vmul.f32 %v349_v43, %v337_v0  ;;  %1249 = vrcp.f32 %v541_v37  ;;  %v843_v2 = vrot.slane %v842_v11, 4 }
  0x9a   :  { %v726_v34 = vadd.f32 %v700_v6, %v400_v51  ;;  %v583_v29 = vadd.f32 1.0, %v1242_v14  ;;  %v266_v38 = vsub.f32 0.0, %v260_v30  ;;  %v996_v32 = vsel %vm168_vm8, %v1690_v31, 0.0 }
  0x9b   :  { %v361_v16 = vadd.f32 %v355_v9, %v343_v57  ;;  %v908_v24 = vsub.s32 2, %v1545_v5  ;;  %v447_v26 = vrot.slane %v446_v21, 1  ;;  %v1145_v41 = vmul.f32 -1.442695, %v476_v48 }
  0x9c   :  { %v947_v4 = vsel %vm168_vm8, %v726_v34, 0.0  ;;  %1251 = vlog2.f32 %v583_v29  ;;  %v275_v40 = vmul.f32 1.442695, %v266_v38  ;;  %v619_v22 = vsub.f32 0.0, %v1687_v61 }
  0x9d   :  { %v1057_v39 = vsel %vm1055_vm4, %v947_v4, %v1008_v23  ;;  %v367_v13 = vsub.f32 0.0, %v361_v16  ;;  %v844_v51 = vadd.f32 %v843_v2, %v842_v11  ;;  %v1151_v52 = vmul.f32 -1.442695, %v1742_v56 }
  0x9e   :  { %v1064_v15 = vsel %vm1062_vm5, %v1057_v39, %v1026_v19  ;;  %1253 = vpow2.f32 %v275_v40  ;;  %v560_v53 = vand.u32 2147483647, %v1742_v56  ;;  %v1754_v3 = vadd.s32 256, %v1541_v1 }
  0x9f   :  { %v1071_v46 = vsel %vm1069_vm6, %v1064_v15, %v1044_v18  ;;  %v385_v50 = vmul.f32 %v379_v25, %v367_v13  ;;  %v601_v18 = vmin.f32 %v1687_v61, 0.0  ;;  %v448_v59 = vmax.f32 %v446_v21, %v447_v26  ;;  %v177_v25 = vld [vmem:[#allocation4 + $0x20] sm:$0xff] }
  0xa0   :  { %v1747_v17 = vpop.eup %1243  ;;  %v1078_v31 = vsel %vm1076_vm7, %v1071_v46, %v996_v32  ;;  %1255 = vpow2.f32 %v1145_v41  ;;  %v625_v62 = vmin.f32 %v619_v22, 0.0  ;;  %v845_v47 = vrot.slane %v844_v51, 2 }
  0xa1   :  { %v1084_v55 = vsel %vm827_vm0, %v1078_v31, 0.0  ;;  %v743_v20 = vrot.slane %v1747_v17, 4  ;;  %v1246_v42 = vpop.eup %1245  ;;  %v401_v28 = vrot.slane %v385_v50, 4  ;;  %v909_v43 = vrot.slane %v1614_v36, %v908_v24 }
  0xa2   :  { %v206_v49 = vadd.f32 1.0, %v1246_v42  ;;  %v1248_v63 = vpop.eup %1247  ;;  %1102 = vst [vmem:[#allocation12 + $0x8] sm:$0xff] %v1084_v55  ;;  %v1761_v27 = vrot.slane %v1653_v10, %v908_v24  ;;  %1257 = vpow2.f32 %v1151_v52  ;;  %v566_v61 = vsub.f32 0.0, %v560_v53 }
  0xa3   :  { %v744_v23 = vmax.f32 %v1747_v17, %v743_v20  ;;  %v1250_v33 = vpop.eup %1249  ;;  %v242_v35 = vadd.f32 1.0, %v1248_v63  ;;  %v302_v44 = vmin.f32 %v1728_v8, 0.0  ;;  %v402_v45 = vadd.f32 %v401_v28, %v385_v50 }
  0xa4   :  { %1259 = vrcp.f32 %v206_v49  ;;  %v469_v37 = vmax.f32 %v448_v59, 0.0  ;;  %v575_v6 = vmul.f32 1.442695, %v566_v61  ;;  %v788_v11 = vsub.f32 %v776_v60, %v782_v58 }
  0xa5   :  { %v745_v7 = vrot.slane %v744_v23, 2  ;;  %v649_v14 = vsub.f32 1.0, %v1747_v17  ;;  %v846_v57 = vadd.f32 %v845_v47, %v844_v51  ;;  %vm169_vm10 = vcmp.lt.s32.totalorder %v1754_v3, %v1587_v54 }
  0xa6   :  { %v1252_v0 = vpop.eup %1251  ;;  %v673_v9 = vsub.f32 %v1747_v17, %v1250_v33  ;;  %1261 = vpow2.f32 %v575_v6  ;;  %v794_v21 = vand.u32 2147483647, %v788_v11  ;;  %v806_v34 = vmul.f32 0.5, %v788_v11 }
  0xa7   :  { %v592_v12 = vmul.f32 0.6931472, %v1252_v0  ;;  %v746_v19 = vmax.f32 %v744_v23, %v745_v7  ;;  %1263 = vrcp.f32 %v242_v35  ;;  %v403_v48 = vrot.slane %v402_v45, 2 }
  0xa8   :  { %v1254_v2 = vpop.eup %1253  ;;  %vm1768_vm11 = vcmp.lt.f32.partialorder %v794_v21, 1.0  ;;  %v812_v38 = vmul.f32 %v806_v34, %v788_v11  ;;  %v1157_v32 = vadd.f32 -0.5, %v794_v21  ;;  %v847_v15 = vrot.slane %v846_v57, 1 }
  0xa9   :  { %v607_v29 = vsub.f32 %v601_v18, %v592_v12  ;;  %v631_v30 = vsub.f32 %v625_v62, %v592_v12  ;;  %v747_v16 = vrot.slane %v746_v19, 1  ;;  %v284_v40 = vadd.f32 1.0, %v1254_v2  ;;  %v1779_v62 = vld [vmem:[#allocation7 + $0x20] sm:$0xff] }
  0xaa   :  { %v1256_v26 = vpop.eup %1255  ;;  %v320_v41 = vsub.f32 0.0, %v1728_v8  ;;  %v824_v46 = vsel %vm1768_vm11, %v812_v38, %v1157_v32  ;;  %v1134_v50 = vmul.f32 -1.442695, %v177_v25  ;;  %v404_v55 = vadd.f32 %v403_v48, %v402_v45 }
  0xab   :  { %v613_v39 = vmax.f32 %v607_v29, -100.0  ;;  %v637_v13 = vmax.f32 %v631_v30, -100.0  ;;  %v748_v24 = vmax.f32 %v746_v19, %v747_v16  ;;  %v506_v52 = vadd.f32 1.0, %v1256_v26 }
  0xac   :  { %v1258_v53 = vpop.eup %1257  ;;  %v679_v18 = vmul.f32 %v673_v9, %v673_v9  ;;  %1265 = vlog2.f32 %v284_v40  ;;  %v849_v20 = vsel %vm827_vm0, %v824_v46, 0.0  ;;  %v848_v59 = vadd.f32 %v847_v15, %v846_v57  ;;  %v477_v15 = vld [vmem:[#allocation4 + $0x50] sm:$0xff] }
  0xad   :  { %v643_v22 = vmul.f32 %v1747_v17, %v613_v39  ;;  %v655_v51 = vmul.f32 %v649_v14, %v637_v13  ;;  %v769_v31 = vmax.f32 %v469_v37, %v748_v24  ;;  %1267 = vrcp.f32 %v506_v52 }
  0xae   :  { %v1777_v42 = vpop.eup %1259  ;;  %v620_v17 = vsub.f32 0.0, %v1742_v56  ;;  %v850_v47 = vrot.slane %v849_v20, 4  ;;  %v912_v49 = vsub.s32 3, %v1545_v5  ;;  %1269 = vpow2.f32 %v1134_v50 }
  0xaf   :  { %v661_v28 = vadd.f32 %v655_v51, %v643_v22  ;;  %v930_v60 = vmul.f32 %v909_v43, %v769_v31  ;;  %v449_v23 = vrot.slane %v1777_v42, 4  ;;  %v1140_v61 = vmul.f32 -1.442695, %v1779_v62 }
  0xb0   :  { %v1262_v33 = vpop.eup %1261  ;;  %v405_v7 = vrot.slane %v404_v55, 1  ;;  %v542_v43 = vadd.f32 1.0, %v1258_v53  ;;  %v261_v0 = vand.u32 2147483647, %v1779_v62  ;;  %v326_v12 = vmin.f32 %v320_v41, 0.0 }
  0xb1   :  { %v667_v58 = vsub.f32 0.0, %v661_v28  ;;  %v936_v63 = vmul.f32 %v930_v60, %v930_v60  ;;  %v450_v35 = vmax.f32 %v1777_v42, %v449_v23  ;;  %v1264_v45 = vpop.eup %1263  ;;  %v584_v11 = vadd.f32 1.0, %v1262_v33 }
  0xb2   :  { %1271 = vpow2.f32 %v1140_v61  ;;  %v602_v14 = vmin.f32 %v1742_v56, 0.0  ;;  %v1793_v19 = vmin.f32 %v620_v17, 0.0  ;;  %v851_v57 = vadd.f32 %v850_v47, %v849_v20  ;;  %v1818_v61 = vld [vmem:[#allocation7 + $0x50] sm:$0xff] }
  0xb3   :  { %v685_v37 = vmul.f32 %v679_v18, %v667_v58  ;;  %v1790_v6 = vsel %vm169_vm10, %v936_v63, 0.0  ;;  %v451_v21 = vrot.slane %v450_v35, 2  ;;  %1273 = vlog2.f32 %v584_v11 }
  0xb4   :  { %v1798_v34 = vrot.slane %v1614_v36, %v912_v49  ;;  %v1801_v29 = vmul.f32 %v1790_v6, %v848_v59  ;;  %v374_v30 = vsub.f32 %v1777_v42, %v1264_v45  ;;  %1275 = vrcp.f32 %v542_v43 }
  0xb5   :  { %v701_v9 = vrot.slane %v685_v37, 4  ;;  %v267_v16 = vsub.f32 0.0, %v261_v0  ;;  %v406_v25 = vadd.f32 %v405_v7, %v404_v55  ;;  %v1807_v48 = vsel %vm169_vm10, %v769_v31, 0.0 }
  0xb6   :  { %v452_v4 = vmax.f32 %v450_v35, %v451_v21  ;;  %v1266_v38 = vpop.eup %1265  ;;  %v991_v32 = vmul.f32 %v1761_v27, %v1790_v6  ;;  %v350_v39 = vsub.f32 1.0, %v1777_v42  ;;  %v852_v13 = vrot.slane %v851_v57, 2 }
  0xb7   :  { %v702_v2 = vadd.f32 %v701_v9, %v685_v37  ;;  %v277_v24 = vmul.f32 1.442695, %v267_v16  ;;  %v1268_v26 = vpop.eup %1267  ;;  %v1045_v41 = vrot.slane %v1790_v6, 5  ;;  %v294_v46 = vmul.f32 0.6931472, %v1266_v38 }
  0xb8   :  { %v453_v50 = vrot.slane %v452_v4, 1  ;;  %v1009_v22 = vrot.slane %v1801_v29, 7  ;;  %v380_v51 = vmul.f32 %v374_v30, %v374_v30  ;;  %v749_v31 = vrot.slane %v1268_v26, 4  ;;  %v1270_v52 = vpop.eup %1269 }
  0xb9   :  { %v703_v40 = vrot.slane %v702_v2, 2  ;;  %1277 = vpow2.f32 %v277_v24  ;;  %v308_v27 = vsub.f32 %v302_v44, %v294_v46  ;;  %v332_v55 = vsub.f32 %v326_v12, %v294_v46 }
  0xba   :  { %v1146_v18 = vmul.f32 -1.442695, %v477_v15  ;;  %v1027_v20 = vrot.slane %v991_v32, 6  ;;  %v750_v28 = vmax.f32 %v1268_v26, %v749_v31  ;;  %v1816_v59 = vadd.f32 %v852_v13, %v851_v57  ;;  %v777_v31 = vld [vmem:[#allocation10 + $0x20] sm:$0x1f] }
  0xbb   :  { %v704_v53 = vadd.f32 %v703_v40, %v702_v2  ;;  %v207_v60 = vadd.f32 1.0, %v1270_v52  ;;  %v314_v47 = vmax.f32 %v308_v27, -100.0  ;;  %v338_v58 = vmax.f32 %v332_v55, -100.0  ;;  %v783_v52 = vld [vmem:[#allocation9 + $0x20] sm:$0x1f] }
  0xbc   :  { %v1272_v23 = vpop.eup %1271  ;;  %v454_v63 = vmax.f32 %v452_v4, %v453_v50  ;;  %v751_v33 = vrot.slane %v750_v28, 2  ;;  %v1152_v8 = vmul.f32 -1.442695, %v1818_v61  ;;  %v650_v6 = vsub.f32 1.0, %v1268_v26 }
  0xbd   :  { %v705_v17 = vrot.slane %v704_v53, 1  ;;  %1279 = vrcp.f32 %v207_v60  ;;  %v243_v7 = vadd.f32 1.0, %v1272_v23  ;;  %v1274_v44 = vpop.eup %1273  ;;  %v344_v43 = vmul.f32 %v1777_v42, %v314_v47 }
  0xbe   :  { %v356_v0 = vmul.f32 %v350_v39, %v338_v58  ;;  %1281 = vpow2.f32 %v1146_v18  ;;  %v1276_v45 = vpop.eup %1275  ;;  %v594_v37 = vmul.f32 0.6931472, %v1274_v44  ;;  %v752_v11 = vmax.f32 %v750_v28, %v751_v33 }
  0xbf   :  { %v706_v35 = vadd.f32 %v705_v17, %v704_v53  ;;  %v561_v12 = vand.u32 2147483647, %v1818_v61  ;;  %v470_v21 = vmax.f32 %v454_v63, 0.0  ;;  %1283 = vrcp.f32 %v243_v7 }
  0xc0   :  { %v362_v9 = vadd.f32 %v356_v0, %v344_v43  ;;  %v608_v29 = vsub.f32 %v602_v14, %v594_v37  ;;  %v632_v30 = vsub.f32 %v1793_v19, %v594_v37  ;;  %v753_v16 = vrot.slane %v752_v11, 1 }
  0xc1   :  { %v727_v57 = vadd.f32 %v706_v35, %v406_v25  ;;  %v567_v2 = vsub.f32 0.0, %v561_v12  ;;  %v674_v38 = vsub.f32 %v1268_v26, %v1276_v45  ;;  %1285 = vpow2.f32 %v1152_v8 }
  0xc2   :  { %v368_v4 = vsub.f32 0.0, %v362_v9  ;;  %v614_v39 = vmax.f32 %v608_v29, -100.0  ;;  %v638_v13 = vmax.f32 %v632_v30, -100.0  ;;  %v754_v24 = vmax.f32 %v752_v11, %v753_v16 }
  0xc3   :  { %v948_v42 = vsel %vm169_vm10, %v727_v57, 0.0  ;;  %v1278_v32 = vpop.eup %1277  ;;  %v577_v19 = vmul.f32 1.442695, %v567_v2  ;;  %v789_v60 = vsub.f32 %v777_v31, %v783_v52  ;;  %v321_v33 = vsub.f32 0.0, %v1779_v62 }
  0xc4   :  { %v1058_v25 = vsel %vm1055_vm4, %v948_v42, %v1009_v22  ;;  %v386_v14 = vmul.f32 %v380_v51, %v368_v4  ;;  %v285_v15 = vadd.f32 1.0, %v1278_v32  ;;  %v644_v46 = vmul.f32 %v1268_v26, %v614_v39  ;;  %v1869_v39 = vld [vmem:[#allocation7 + $0x28] sm:$0xff] }
  0xc5   :  { %v1065_v56 = vsel %vm1062_vm5, %v1058_v25, %v1027_v20  ;;  %v656_v50 = vmul.f32 %v650_v6, %v638_v13  ;;  %v1832_v3 = vmax.f32 %v470_v21, %v754_v24  ;;  %v1837_v22 = vadd.s32 384, %v1541_v1  ;;  %v178_v6 = vld [vmem:[#allocation4 + $0x28] sm:$0xff] }
  0xc6   :  { %v1072_v40 = vsel %vm1069_vm6, %v1065_v56, %v1045_v41  ;;  %v407_v27 = vrot.slane %v386_v14, 4  ;;  %1287 = vlog2.f32 %v285_v15  ;;  %v680_v41 = vmul.f32 %v674_v38, %v674_v38 }
  0xc7   :  { %v1079_v53 = vsel %vm1076_vm7, %v1072_v40, %v1807_v48  ;;  %v1839_v55 = vpop.eup %1279  ;;  %v662_v18 = vadd.f32 %v656_v50, %v644_v46  ;;  %v931_v26 = vmul.f32 %v1798_v34, %v1832_v3  ;;  %v854_v48 = vrot.slane %v1816_v59, 1 }
  0xc8   :  { %v1085_v51 = vsel %vm827_vm0, %v1079_v53, 0.0  ;;  %v1282_v20 = vpop.eup %1281  ;;  %v408_v28 = vadd.f32 %v407_v27, %v386_v14  ;;  %1289 = vpow2.f32 %v577_v19  ;;  %v455_v7 = vrot.slane %v1839_v55, 4 }
  0xc9   :  { %v668_v23 = vsub.f32 0.0, %v662_v18  ;;  %v507_v17 = vadd.f32 1.0, %v1282_v20  ;;  %v1284_v47 = vpop.eup %1283  ;;  %1103 = vst [vmem:[#allocation12 + $0x10] sm:$0xff] %v1085_v51  ;;  %v937_v63 = vmul.f32 %v931_v26, %v931_v26  ;;  %vm170_vm12 = vcmp.lt.s32.totalorder %v1837_v22, %v1587_v54 }
  0xca   :  { %v409_v58 = vrot.slane %v408_v28, 2  ;;  %v974_v44 = vrot.slane %v1653_v10, %v912_v49  ;;  %v795_v35 = vand.u32 2147483647, %v789_v60  ;;  %v855_v45 = vadd.f32 %v854_v48, %v1816_v59 }
  0xcb   :  { %v686_v34 = vmul.f32 %v680_v41, %v668_v23  ;;  %1291 = vrcp.f32 %v507_v17  ;;  %v1286_v8 = vpop.eup %1285  ;;  %v303_v37 = vmin.f32 %v1779_v62, 0.0  ;;  %v1857_v11 = vsel %vm170_vm12, %v937_v63, 0.0 }
  0xcc   :  { %v410_v43 = vadd.f32 %v409_v58, %v408_v28  ;;  %v327_v12 = vmin.f32 %v321_v33, 0.0  ;;  %v456_v57 = vmax.f32 %v1839_v55, %v455_v7  ;;  %v807_v9 = vmul.f32 0.5, %v789_v60  ;;  %v478_v33 = vld [vmem:[#allocation4 + $0x58] sm:$0xff] }
  0xcd   :  { %v707_v0 = vrot.slane %v686_v34, 4  ;;  %v351_v49 = vsub.f32 1.0, %v1839_v55  ;;  %v603_v29 = vmin.f32 %v1818_v61, 0.0  ;;  %v621_v30 = vsub.f32 0.0, %v1818_v61 }
  0xce   :  { %v375_v62 = vsub.f32 %v1839_v55, %v1284_v47  ;;  %v543_v16 = vadd.f32 1.0, %v1286_v8  ;;  %vm1864_vm13 = vcmp.lt.f32.partialorder %v795_v35, 1.0  ;;  %v1135_v42 = vmul.f32 -1.442695, %v178_v6 }
  0xcf   :  { %v708_v21 = vadd.f32 %v707_v0, %v686_v34  ;;  %v411_v4 = vrot.slane %v410_v43, 1  ;;  %v955_v32 = vmul.f32 %v1857_v11, %v855_v45  ;;  %v457_v13 = vrot.slane %v456_v57, 2 }
  0xd0   :  { %v1288_v59 = vpop.eup %1287  ;;  %v813_v24 = vmul.f32 %v807_v9, %v789_v60  ;;  %v1158_v56 = vadd.f32 -0.5, %v795_v35  ;;  %1293 = vpow2.f32 %v1135_v42  ;;  %v992_v19 = vmul.f32 %v974_v44, %v1857_v11 }
  0xd1   :  { %v709_v38 = vrot.slane %v708_v21, 2  ;;  %v296_v25 = vmul.f32 0.6931472, %v1288_v59  ;;  %v381_v50 = vmul.f32 %v375_v62, %v375_v62  ;;  %v1141_v52 = vmul.f32 -1.442695, %v1869_v39 }
  0xd2   :  { %v1290_v14 = vpop.eup %1289  ;;  %v262_v53 = vand.u32 2147483647, %v1869_v39  ;;  %v412_v51 = vadd.f32 %v411_v4, %v410_v43  ;;  %v458_v20 = vmax.f32 %v456_v57, %v457_v13  ;;  %v825_v60 = vsel %vm1864_vm13, %v813_v24, %v1158_v56 }
  0xd3   :  { %v710_v15 = vadd.f32 %v709_v38, %v708_v21  ;;  %v309_v40 = vsub.f32 %v303_v37, %v296_v25  ;;  %v333_v46 = vsub.f32 %v327_v12, %v296_v25  ;;  %v585_v31 = vadd.f32 1.0, %v1290_v14 }
  0xd4   :  { %v1010_v47 = vrot.slane %v955_v32, 7  ;;  %v268_v63 = vsub.f32 0.0, %v262_v53  ;;  %v1028_v34 = vrot.slane %v992_v19, 6  ;;  %v856_v44 = vsel %vm827_vm0, %v825_v60, 0.0 }
  0xd5   :  { %v1874_v27 = vpop.eup %1291  ;;  %v711_v18 = vrot.slane %v710_v15, 1  ;;  %v315_v41 = vmax.f32 %v309_v40, -100.0  ;;  %v339_v26 = vmax.f32 %v333_v46, -100.0  ;;  %1295 = vlog2.f32 %v585_v31 }
  0xd6   :  { %v755_v28 = vrot.slane %v1874_v27, 4  ;;  %1297 = vrcp.f32 %v543_v16  ;;  %v1046_v35 = vrot.slane %v1857_v11, 5  ;;  %v459_v43 = vrot.slane %v458_v20, 1  ;;  %v1891_v11 = vld [vmem:[#allocation7 + $0x58] sm:$0xff] }
  0xd7   :  { %v712_v23 = vadd.f32 %v711_v18, %v710_v15  ;;  %v345_v48 = vmul.f32 %v1839_v55, %v315_v41  ;;  %v357_v17 = vmul.f32 %v351_v49, %v339_v26  ;;  %1299 = vpow2.f32 %v1141_v52 }
  0xd8   :  { %v756_v58 = vmax.f32 %v1874_v27, %v755_v28  ;;  %v279_v45 = vmul.f32 1.442695, %v268_v63  ;;  %v998_v37 = vsel %vm170_vm12, %v1832_v3, 0.0  ;;  %v1147_v12 = vmul.f32 -1.442695, %v478_v33 }
  0xd9   :  { %v728_v7 = vadd.f32 %v712_v23, %v412_v51  ;;  %v363_v8 = vadd.f32 %v357_v17, %v345_v48  ;;  %v857_v49 = vrot.slane %v856_v44, 4  ;;  %v460_v42 = vmax.f32 %v458_v20, %v459_v43  ;;  %v778_v20 = vld [vmem:[#allocation10 + $0x28] sm:$0x1f]  ;;  %v784_v28 = vld [vmem:[#allocation9 + $0x28] sm:$0x1f] }
  0xda   :  { %v757_v0 = vrot.slane %v756_v58, 2  ;;  %v1294_v57 = vpop.eup %1293  ;;  %1301 = vpow2.f32 %v279_v45  ;;  %v1153_v3 = vmul.f32 -1.442695, %v1891_v11  ;;  %v627_v38 = vmin.f32 %v621_v30, 0.0 }
  0xdb   :  { %v949_v55 = vsel %vm170_vm12, %v728_v7, 0.0  ;;  %v369_v6 = vsub.f32 0.0, %v363_v8  ;;  %v208_v16 = vadd.f32 1.0, %v1294_v57  ;;  %1303 = vpow2.f32 %v1147_v12 }
  0xdc   :  { %v1059_v9 = vsel %vm1055_vm4, %v949_v55, %v1010_v47  ;;  %v758_v21 = vmax.f32 %v756_v58, %v757_v0  ;;  %v562_v32 = vand.u32 2147483647, %v1891_v11  ;;  %v858_v56 = vadd.f32 %v857_v49, %v856_v44 }
  0xdd   :  { %v1066_v59 = vsel %vm1062_vm5, %v1059_v9, %v1028_v34  ;;  %v387_v62 = vmul.f32 %v381_v50, %v369_v6  ;;  %1305 = vrcp.f32 %v208_v16  ;;  %v471_v46 = vmax.f32 %v460_v42, 0.0 }
  0xde   :  { %v1073_v2 = vsel %vm1069_vm6, %v1066_v59, %v1046_v35  ;;  %v759_v22 = vrot.slane %v758_v21, 1  ;;  %v568_v19 = vsub.f32 0.0, %v562_v32  ;;  %v916_v31 = vsub.s32 4, %v1545_v5 }
  0xdf   :  { %v1080_v4 = vsel %vm1076_vm7, %v1073_v2, %v998_v37  ;;  %v1296_v25 = vpop.eup %1295  ;;  %v413_v24 = vrot.slane %v387_v62, 4  ;;  %1307 = vpow2.f32 %v1153_v3  ;;  %v651_v53 = vsub.f32 1.0, %v1874_v27 }
  0xe0   :  { %v1086_v13 = vsel %vm827_vm0, %v1080_v4, 0.0  ;;  %v1298_v14 = vpop.eup %1297  ;;  %v596_v15 = vmul.f32 0.6931472, %v1296_v25  ;;  %v760_v50 = vmax.f32 %v758_v21, %v759_v22  ;;  %v579_v51 = vmul.f32 1.442695, %v568_v19 }
  0xe1   :  { %v1300_v40 = vpop.eup %1299  ;;  %1104 = vst [vmem:[#allocation12 + $0x18] sm:$0xff] %v1086_v13  ;;  %v414_v18 = vadd.f32 %v413_v24, %v387_v62  ;;  %v675_v41 = vsub.f32 %v1874_v27, %v1298_v14  ;;  %v859_v26 = vrot.slane %v858_v56, 2  ;;  %v917_v61 = vrot.slane %v1614_v36, %v916_v31 }
  0xe2   :  { %v609_v30 = vsub.f32 %v603_v29, %v596_v15  ;;  %v633_v52 = vsub.f32 %v627_v38, %v596_v15  ;;  %v244_v48 = vadd.f32 1.0, %v1300_v40  ;;  %1309 = vpow2.f32 %v579_v51 }
  0xe3   :  { %v1906_v47 = vmax.f32 %v471_v46, %v760_v50  ;;  %v790_v7 = vsub.f32 %v778_v20, %v784_v28  ;;  %v681_v34 = vmul.f32 %v675_v41, %v675_v41  ;;  %v415_v35 = vrot.slane %v414_v18, 2 }
  0xe4   :  { %v615_v60 = vmax.f32 %v609_v30, -100.0  ;;  %v639_v23 = vmax.f32 %v633_v52, -100.0  ;;  %v1302_v17 = vpop.eup %1301  ;;  %v860_v0 = vadd.f32 %v859_v26, %v858_v56  ;;  %1311 = vrcp.f32 %v244_v48 }
  0xe5   :  { %v1304_v29 = vpop.eup %1303  ;;  %v286_v33 = vadd.f32 1.0, %v1302_v17  ;;  %v1913_v45 = vadd.s32 512, %v1541_v1  ;;  %v932_v55 = vmul.f32 %v917_v61, %v1906_v47  ;;  %v796_v6 = vand.u32 2147483647, %v790_v7 }
  0xe6   :  { %v645_v58 = vmul.f32 %v1874_v27, %v615_v60  ;;  %v657_v63 = vmul.f32 %v651_v53, %v639_v23  ;;  %v508_v8 = vadd.f32 1.0, %v1304_v29  ;;  %v808_v12 = vmul.f32 0.5, %v790_v7 }
  0xe7   :  { %v1910_v44 = vpop.eup %1305  ;;  %1313 = vlog2.f32 %v286_v33  ;;  %v416_v21 = vadd.f32 %v415_v35, %v414_v18  ;;  %v861_v59 = vrot.slane %v860_v0, 1  ;;  %vm171_vm14 = vcmp.lt.s32.totalorder %v1913_v45, %v1587_v54 }
  0xe8   :  { %v663_v43 = vadd.f32 %v657_v63, %v645_v58  ;;  %v461_v37 = vrot.slane %v1910_v44, 4  ;;  %1315 = vrcp.f32 %v508_v8  ;;  %v938_v62 = vmul.f32 %v932_v55, %v932_v55 }
  0xe9   :  { %v1308_v57 = vpop.eup %1307  ;;  %v322_v16 = vsub.f32 0.0, %v1869_v39  ;;  %v814_v4 = vmul.f32 %v808_v12, %v790_v7  ;;  %v1159_v38 = vadd.f32 -0.5, %v796_v6  ;;  %vm1921_vm15 = vcmp.lt.f32.partialorder %v796_v6, 1.0 }
  0xea   :  { %v669_v27 = vsub.f32 0.0, %v663_v43  ;;  %v462_v9 = vmax.f32 %v1910_v44, %v461_v37  ;;  %v544_v3 = vadd.f32 1.0, %v1308_v57  ;;  %v417_v13 = vrot.slane %v416_v21, 1 }
  0xeb   :  { %v862_v56 = vadd.f32 %v861_v59, %v860_v0  ;;  %v978_v14 = vrot.slane %v1653_v10, %v916_v31  ;;  %v944_v15 = vsel %vm171_vm14, %v938_v62, 0.0  ;;  %v304_v19 = vmin.f32 %v1869_v39, 0.0 }
  0xec   :  { %v687_v49 = vmul.f32 %v681_v34, %v669_v27  ;;  %v463_v2 = vrot.slane %v462_v9, 2  ;;  %v1310_v42 = vpop.eup %1309  ;;  %v328_v30 = vmin.f32 %v322_v16, 0.0  ;;  %v826_v52 = vsel %vm1921_vm15, %v814_v4, %v1159_v38 }
  0xed   :  { %v586_v32 = vadd.f32 1.0, %v1310_v42  ;;  %v622_v51 = vsub.f32 0.0, %v1891_v11  ;;  %v418_v31 = vadd.f32 %v417_v13, %v416_v21  ;;  %v956_v26 = vmul.f32 %v944_v15, %v862_v56 }
  0xee   :  { %v713_v22 = vrot.slane %v687_v49, 4  ;;  %v464_v40 = vmax.f32 %v462_v9, %v463_v2  ;;  %v1312_v46 = vpop.eup %1311  ;;  %v993_v28 = vmul.f32 %v978_v14, %v944_v15  ;;  %v863_v23 = vsel %vm827_vm0, %v826_v52, 0.0 }
  0xef   :  { %1317 = vlog2.f32 %v586_v32  ;;  %v352_v29 = vsub.f32 1.0, %v1910_v44  ;;  %v999_v58 = vsel %vm171_vm14, %v1906_v47, 0.0  ;;  %v376_v63 = vsub.f32 %v1910_v44, %v1312_v46 }
  0xf0   :  { %v714_v24 = vadd.f32 %v713_v22, %v687_v49  ;;  %1319 = vrcp.f32 %v544_v3  ;;  %v465_v60 = vrot.slane %v464_v40, 1  ;;  %v604_v33 = vmin.f32 %v1891_v11, 0.0 }
  0xf1   :  { %v1314_v53 = vpop.eup %1313  ;;  %v864_v43 = vrot.slane %v863_v23, 4  ;;  %v1011_v0 = vrot.slane %v956_v26, 7  ;;  %v628_v37 = vmin.f32 %v622_v51, 0.0  ;;  %v1029_v12 = vrot.slane %v993_v28, 6 }
  0xf2   :  { %v715_v50 = vrot.slane %v714_v24, 2  ;;  %v1316_v18 = vpop.eup %1315  ;;  %v298_v20 = vmul.f32 0.6931472, %v1314_v53  ;;  %v466_v55 = vmax.f32 %v464_v40, %v465_v60  ;;  %v1047_v47 = vrot.slane %v944_v15, 5 }
  0xf3   :  { %v761_v39 = vrot.slane %v1316_v18, 4  ;;  %v382_v49 = vmul.f32 %v376_v63, %v376_v63  ;;  %v920_v11 = vsub.s32 5, %v1545_v5  ;;  %v865_v22 = vadd.f32 %v864_v43, %v863_v23 }
  0xf4   :  { %v716_v41 = vadd.f32 %v715_v50, %v714_v24  ;;  %v310_v17 = vsub.f32 %v304_v19, %v298_v20  ;;  %v334_v61 = vsub.f32 %v328_v30, %v298_v20  ;;  %v472_v4 = vmax.f32 %v466_v55, 0.0 }
  0xf5   :  { %v762_v7 = vmax.f32 %v1316_v18, %v761_v39  ;;  %v652_v38 = vsub.f32 1.0, %v1316_v18  ;;  %v866_v30 = vrot.slane %v865_v22, 2  ;;  %v921_v52 = vrot.slane %v1614_v36, %v920_v11 }
  0xf6   :  { %v717_v48 = vrot.slane %v716_v41, 1  ;;  %v316_v8 = vmax.f32 %v310_v17, -100.0  ;;  %v340_v35 = vmax.f32 %v334_v61, -100.0 }
  0xf7   :  { %v763_v27 = vrot.slane %v762_v7, 2  ;;  %v867_v28 = vadd.f32 %v866_v30, %v865_v22 }
  0xf8   :  { %v718_v34 = vadd.f32 %v717_v48, %v716_v41  ;;  %v346_v57 = vmul.f32 %v1910_v44, %v316_v8  ;;  %v358_v9 = vmul.f32 %v352_v29, %v340_v35  ;;  %v157_v48 = vadd.s32 640, %v1541_v1 }
  0xf9   :  { %v1318_v21 = vpop.eup %1317  ;;  %v764_v59 = vmax.f32 %v762_v7, %v763_v27  ;;  %v868_v61 = vrot.slane %v867_v28, 1  ;;  %v982_v8 = vrot.slane %v1653_v10, %v920_v11 }
  0xfa   :  { %v729_v6 = vadd.f32 %v718_v34, %v418_v31  ;;  %v1320_v62 = vpop.eup %1319  ;;  %v364_v2 = vadd.f32 %v358_v9, %v346_v57  ;;  %v598_v42 = vmul.f32 0.6931472, %v1318_v21  ;;  %vm172_vm1 = vcmp.lt.s32.totalorder %v157_v48, %v1587_v54 }
  0xfb   :  { %v765_v44 = vrot.slane %v764_v59, 1  ;;  %v676_v56 = vsub.f32 %v1316_v18, %v1320_v62 }
  0xfc   :  { %v950_v16 = vsel %vm171_vm14, %v729_v6, 0.0  ;;  %v370_v25 = vsub.f32 0.0, %v364_v2  ;;  %v610_v13 = vsub.f32 %v604_v33, %v598_v42  ;;  %v634_v24 = vsub.f32 %v628_v37, %v598_v42 }
  0xfd   :  { %v1060_v3 = vsel %vm1055_vm4, %v950_v16, %v1011_v0  ;;  %v766_v14 = vmax.f32 %v764_v59, %v765_v44  ;;  %v682_v20 = vmul.f32 %v676_v56, %v676_v56 }
  0xfe   :  { %v1067_v32 = vsel %vm1062_vm5, %v1060_v3, %v1029_v12  ;;  %v388_v15 = vmul.f32 %v382_v49, %v370_v25  ;;  %v616_v19 = vmax.f32 %v610_v13, -100.0  ;;  %v640_v40 = vmax.f32 %v634_v24, -100.0 }
  0xff   :  { %v1074_v5 = vsel %vm1069_vm6, %v1067_v32, %v1047_v47  ;;  %v772_v50 = vmax.f32 %v472_v4, %v766_v14 }
 0x100   :  { %v1081_v45 = vsel %vm1076_vm7, %v1074_v5, %v999_v58  ;;  %v419_v53 = vrot.slane %v388_v15, 4  ;;  %v646_v51 = vmul.f32 %v1316_v18, %v616_v19  ;;  %v658_v31 = vmul.f32 %v652_v38, %v640_v40 }
 0x101   :  { %v1087_v46 = vsel %vm827_vm0, %v1081_v45, 0.0  ;;  %v933_v23 = vmul.f32 %v921_v52, %v772_v50  ;;  %v869_v18 = vadd.f32 %v868_v61, %v867_v28  ;;  %v1000_v21 = vsel %vm172_vm1, %v772_v50, 0.0 }
 0x102   :  { %1105 = vst [vmem:[#allocation12 + $0x20] sm:$0xff] %v1087_v46  ;;  %v420_v41 = vadd.f32 %v419_v53, %v388_v15  ;;  %v664_v26 = vadd.f32 %v658_v31, %v646_v51 }
 0x103   :  { %v939_v63 = vmul.f32 %v933_v23, %v933_v23 }
 0x104   :  { %v421_v60 = vrot.slane %v420_v41, 2  ;;  %v670_v39 = vsub.f32 0.0, %v664_v26 }
 0x105   :  { %v945_v34 = vsel %vm172_vm1, %v939_v63, 0.0 }
 0x106   :  { %v688_v17 = vmul.f32 %v682_v20, %v670_v39  ;;  %v422_v29 = vadd.f32 %v421_v60, %v420_v41  ;;  %v957_v43 = vmul.f32 %v945_v34, %v869_v18  ;;  %v994_v55 = vmul.f32 %v982_v8, %v945_v34 }
 0x107   :  { %v1048_v57 = vrot.slane %v945_v34, 5 }
 0x108   :  { %v719_v58 = vrot.slane %v688_v17, 4  ;;  %v423_v33 = vrot.slane %v422_v29, 1  ;;  %v1012_v27 = vrot.slane %v957_v43, 7  ;;  %v1030_v12 = vrot.slane %v994_v55, 6 }
 0x10a   :  { %v720_v36 = vadd.f32 %v719_v58, %v688_v17  ;;  %v424_v0 = vadd.f32 %v423_v33, %v422_v29 }
 0x10c   :  { %v721_v7 = vrot.slane %v720_v36, 2 }
 0x10e   :  { %v722_v35 = vadd.f32 %v721_v7, %v720_v36 }
 0x110   :  { %v723_v1 = vrot.slane %v722_v35, 1 }
 0x112   :  { %v724_v37 = vadd.f32 %v723_v1, %v722_v35 }
 0x114   :  { %v730_v6 = vadd.f32 %v724_v37, %v424_v0 }
 0x116   :  { %v951_v9 = vsel %vm172_vm1, %v730_v6, 0.0 }
 0x117   :  { %v1061_v47 = vsel %vm1055_vm4, %v951_v9, %v1012_v27 }
 0x118   :  { %v1068_v10 = vsel %vm1062_vm5, %v1061_v47, %v1030_v12 }
 0x119   :  { %v1075_v49 = vsel %vm1069_vm6, %v1068_v10, %v1048_v57 }
 0x11a   :  { %v1082_v59 = vsel %vm1076_vm7, %v1075_v49, %v1000_v21 }
 0x11b   :  { %v1088_v11 = vsel %vm827_vm0, %v1082_v59, 0.0 }
 0x11c   :  { %1106 = vst [vmem:[#allocation12 + $0x28] sm:$0xff] %v1088_v11 }
 0x11d   :  { %1420 = shalt.err (!%p1417_p8)
}
 0x11e   :  { %s1421_s9 = scalar_lea.hbm %s1985_s7, 768 }
 0x11f   :  { %p1422_p9 = scmp.ne.s32.totalorder %s1985_s7, %s1421_s9  ;;  %p1425_p10 = scmp.lt.u32.totalorder %s1421_s9, %s1985_s7 }
 0x121   :  { %p1427_p11 = pnand %p1425_p10, %p1422_p9 }
 0x123   :  { %1430 = shalt.err (!%p1427_p11)
}
 0x124   :  { %1116 = dma.vmem_to_hbm [thread:$0]  %s1114_s28, 768, %s1985_s7, [#allocation6]  }
 0x125   :  { %1437 = dma.done.wait [#allocation6], 768  }
 0x126   :  { %1438 = vsyncadd [#allocation6], 4294966528 }
 0x127   :  { %1120 = vsyncpa [#allocation5], 1 }
 0x128   :  { %1121 = vsyncpa [#allocation8], 1 }
 0x129   :  { %1122 = vsyncpa [#allocation11], 1 }
 0x12a   :  { %1123 = vsyncpa [#allocation6], 1 }

</bundles_post_ra>
